<compile_context>
chip_gen: v7x
topology: tpu7x:2x2x1
jax: 0.10.0
libtpu: 0.0.40
codegen_flags: <defaults>
</compile_context>

<pallas_src>
import functools

import jax
import jax.numpy as jnp
from jax import lax
from jax.experimental import pallas as pl
from jax.experimental.pallas import tpu as pltpu


def _round_up(a, b):
    return (a + b - 1) // b * b


def _fold_linear1(params, emb_pro):
    """Fold eval-mode BatchNorm (and linear_map if emb_pro) into linear1."""
    f32, bf16 = jnp.float32, jnp.bfloat16
    eps = 1e-5
    scale = (params["bn_gamma"] / jnp.sqrt(params["bn_var"] + eps)).astype(f32)
    shift = (params["bn_beta"] - params["bn_mean"] * scale).astype(f32)
    w1 = params["w1"].astype(f32)
    w1_eff = (scale[:, None] * w1).astype(bf16)                    # [d, 20d]
    b1_eff = shift @ w1 + params["b1"].astype(f32)                 # [20d]
    wmap_eff = None
    if emb_pro == 1:
        wmap_eff = params["wmap"].astype(f32) @ w1                 # [2, 20d]
        b1_eff = b1_eff + params["bmap"].astype(f32) @ w1
    return w1_eff, b1_eff, wmap_eff


def _mlp_low_kernel(*refs, walk_len, emb_pro, less_para, mse):
    """One batch tile: x (TM, d) bf16 -> o (1, 1, TM) f32 (lane-dense)."""
    f32 = jnp.float32
    bf16 = jnp.bfloat16
    w = walk_len

    it = iter(refs)
    x_ref, dp_ref = next(it), next(it)
    w1_ref, b1_ref = next(it), next(it)
    wmap_ref = next(it) if emb_pro == 1 else None
    if less_para == 0:
        w2_ref, b2_ref = next(it), next(it)
    w3_ref, b3_ref = next(it), next(it)
    w4_ref, b4_ref = next(it), next(it)
    w5_ref, b5_ref = next(it), next(it)
    w1wl_ref, b1wl_ref = next(it), next(it)
    w2wl_ref, b2wl_ref = next(it), next(it)
    o_ref = next(it)

    x = x_ref[...]                                           # [TM, d] bf16

    def col(c):
        return x[:, c:c + 1].astype(f32)                     # [TM, 1] f32

    # head columns: x[:,2w+2]+x[:,3w+2] and x[:,4w+2]+x[:,5w+2]
    xh0 = col(2 * w + 2) + col(3 * w + 2)
    xh1 = col(4 * w + 2) + col(5 * w + 2)

    # linear1 with BatchNorm (and linear_map) folded in.  MXU bf16 / f32 acc.
    acc = jnp.dot(x, w1_ref[...], preferred_element_type=f32)
    if emb_pro == 1:
        # K=2 contraction -> VPU broadcast-FMA on the f32 accumulator.
        acc = acc + xh0 * wmap_ref[0:1, :] + xh1 * wmap_ref[1:2, :]
    h = jnp.maximum(acc + b1_ref[...], 0.0).astype(bf16)     # bias+ReLU+downcast

    if less_para == 0:
        acc = jnp.dot(h, w2_ref[...], preferred_element_type=f32)
        h = jnp.maximum(acc + b2_ref[...], 0.0).astype(bf16)

    acc = jnp.dot(h, w3_ref[...], preferred_element_type=f32)
    h = jnp.maximum(acc + b3_ref[...], 0.0).astype(bf16)

    acc = jnp.dot(h, w4_ref[...], preferred_element_type=f32)
    h = jnp.maximum(acc + b4_ref[...], 0.0).astype(bf16)     # [TM, d]

    # F.dropout(p=0.5, training=False) == identity (eval mode).

    # Width-1 projections as lane-dense [1, TM] NT matmuls (contract last dims)
    # so the output store is unmasked and needs no sublane->lane relayout.
    nt = (((1,), (1,)), ((), ()))
    out5 = lax.dot_general(w5_ref[...], h, nt,
                           preferred_element_type=f32)                      # [1, TM]

    alp = jnp.maximum(xh0 * w1wl_ref[0:1, :] + xh1 * w1wl_ref[1:2, :]
                      + b1wl_ref[...], 0.0)                                  # [TM, d]
    gate = lax.dot_general(w2wl_ref[...], alp.astype(bf16), nt,
                           preferred_element_type=f32)                      # [1, TM]

    res = (out5 + b5_ref[...]) + (gate + b2wl_ref[...]) * dp_ref[0]
    if mse:
        res = jax.nn.sigmoid(res)
    o_ref[0] = res.astype(o_ref.dtype)


def mlp_low_forward(x, d_p, params, *, walk_len, emb_pro, less_para, mse=True,
                    block_rows=1024):
    """x: [N, input_size] f32, d_p: [N] f32. Returns [N, 1] f32 (eval mode)."""
    n, d = x.shape
    assert d >= 5 * walk_len + 3, "input_size must cover the gathered columns"
    assert params["wmap"].shape[0] == 2, "forward gathers exactly 2 columns"

    f32, bf16 = jnp.float32, jnp.bfloat16
    d20, d10 = 20 * d, 10 * d

    # ---- fold BN (+ linear_map) into linear1; prepare resident operands ----
    w1_eff, b1_eff, wmap_eff = _fold_linear1(params, emb_pro)

    def row(v):
        return jnp.asarray(v, f32).reshape(1, -1)

    const_arrays = [w1_eff, row(b1_eff)]
    if emb_pro == 1:
        const_arrays.append(wmap_eff.astype(f32))
    if less_para == 0:
        const_arrays += [params["w2"].astype(bf16), row(params["b2"])]
    const_arrays += [
        params["w3"].astype(bf16), row(params["b3"]),
        params["w4"].astype(bf16), row(params["b4"]),
        params["w5"].reshape(1, d).astype(bf16),
        jnp.asarray(params["b5"], f32).reshape(1, 1),
        params["w1wl"].astype(f32), row(params["b1wl"]),
        params["w2wl"].reshape(1, d).astype(bf16),
        jnp.asarray(params["b2wl"], f32).reshape(1, 1),
    ]
    weight_bytes = sum(int(a.size) * a.dtype.itemsize for a in const_arrays)

    # ---- generation-aware VMEM budget & row-tile selection ----
    try:
        cap = int(pltpu.get_tpu_info().vmem_capacity_bytes)
    except Exception:
        cap = 64 * 1024 * 1024                 # valid on every TPU generation
    vmem_budget = int(cap * 0.85)              # headroom for Mosaic scratch etc.

    # Per-row bytes: double-buffered streams (x bf16, dp f32, out f32) plus the
    # live inter-layer activations (bf16 h + f32 MXU accumulator), generous.
    per_row = 2 * (2 * d + 4 + 4) + 8 * d20 + 6 * d10 + 10 * d
    # Constants only DMA once (constant index_map) but default pipelining still
    # allocates two buffers for them -> count them twice.
    avail = vmem_budget - 2 * weight_bytes - (4 << 20)

    tm = 128
    for cand in (2048, 1024, 512, 256, 128):
        if cand > block_rows or cand > max(128, _round_up(n, 128)):
            continue
        if cand * per_row <= avail:
            tm = cand
            break
    # v7x megacore: keep >= 2 grid steps when there is enough data so that both
    # TensorCores get batch tiles.
    while tm > 128 and _round_up(n, tm) // tm < 2:
        tm //= 2

    n_pad = _round_up(n, tm)
    n_grid = n_pad // tm

    # ---- streamed operands (x in bf16, d_p lane-dense) ----
    x_b = x.astype(bf16)
    dp = d_p.astype(f32)
    if n_pad != n:
        x_b = jnp.pad(x_b, ((0, n_pad - n), (0, 0)))
        dp = jnp.pad(dp, (0, n_pad - n))
    dp3 = dp.reshape(n_grid, 1, tm)

    x_spec = pl.BlockSpec((tm, d), lambda i: (i, 0))
    dp_spec = pl.BlockSpec((1, 1, tm), lambda i: (i, 0, 0))

    def const_spec(a):
        zeros = (0,) * a.ndim
        return pl.BlockSpec(tuple(a.shape), lambda i, _z=zeros: _z)

    in_specs = [x_spec, dp_spec] + [const_spec(a) for a in const_arrays]
    out_spec = pl.BlockSpec((1, 1, tm), lambda i: (i, 0, 0))

    # ---- advisory cost estimate (dominated by linear1..4) ----
    flops_row = 2 * d * d20 + 2 * d20 * d10 + 2 * d10 * d + 2 * d + 2 * d
    if less_para == 0:
        flops_row += 2 * d20 * d20
    if emb_pro == 1:
        flops_row += 4 * d20
    flops_row += 4 * d + 2 * d
    bytes_accessed = n_pad * (2 * d + 4 + 4) + weight_bytes
    cost = pl.CostEstimate(flops=int(flops_row) * int(n_pad),
                           transcendentals=int(n_pad) if mse else 0,
                           bytes_accessed=int(bytes_accessed))

    kernel = functools.partial(_mlp_low_kernel, walk_len=walk_len,
                               emb_pro=emb_pro, less_para=less_para, mse=mse)

    out3 = pl.pallas_call(
        kernel,
        out_shape=jax.ShapeDtypeStruct((n_grid, 1, tm), jnp.float32),
        grid=(n_grid,),
        in_specs=in_specs,
        out_specs=out_spec,
        compiler_params=pltpu.CompilerParams(
            dimension_semantics=("parallel",),
            vmem_limit_bytes=vmem_budget),
        cost_estimate=cost,
    )(x_b, dp3, *const_arrays)

    return out3.reshape(n_pad, 1)[:n]


def init_params(key, input_size, heads):
    """Deterministic synthetic params. Linear weights stored [in, out]."""
    d = input_size
    dims = {
        "w1": (d, d * 20), "w2": (d * 20, d * 20), "w3": (d * 20, d * 10),
        "w4": (d * 10, d), "w5": (d, 1),
        "wmap": (heads, d), "w1wl": (heads, d), "w2wl": (d, 1),
    }
    params = {}
    keys = jax.random.split(key, 2 * len(dims))
    for i, (name, (fin, fout)) in enumerate(sorted(dims.items())):
        bound = 1.0 / jnp.sqrt(fin)
        params[name] = jax.random.uniform(
            keys[2 * i], (fin, fout), jnp.float32, minval=-bound, maxval=bound)
        params["b" + name[1:]] = jax.random.uniform(
            keys[2 * i + 1], (fout,), jnp.float32, minval=-bound, maxval=bound)
    # BatchNorm1d state (fresh init: identity transform in eval mode)
    params["bn_gamma"] = jnp.ones((d,), jnp.float32)
    params["bn_beta"] = jnp.zeros((d,), jnp.float32)
    params["bn_mean"] = jnp.zeros((d,), jnp.float32)
    params["bn_var"] = jnp.ones((d,), jnp.float32)
    return params


def reference_forward(x, d_p, params, *, walk_len, emb_pro, less_para, mse=True):
    """Pure-f32 JAX reference mirroring the PyTorch forward (eval mode)."""
    w = walk_len
    eps = 1e-5
    out = (x - params["bn_mean"]) / jnp.sqrt(params["bn_var"] + eps)
    out = out * params["bn_gamma"] + params["bn_beta"]
    xh = x[:, (2 * w + 2, 4 * w + 2)] + x[:, (3 * w + 2, 5 * w + 2)]
    if emb_pro == 1:
        out = out + (xh @ params["wmap"] + params["bmap"])
    out = jax.nn.relu(out @ params["w1"] + params["b1"])
    if less_para == 0:
        out = jax.nn.relu(out @ params["w2"] + params["b2"])
    out = jax.nn.relu(out @ params["w3"] + params["b3"])
    out = jax.nn.relu(out @ params["w4"] + params["b4"])
    out = out @ params["w5"] + params["b5"]
    alp = jax.nn.relu(xh @ params["w1wl"] + params["b1wl"])
    out = out + (alp @ params["w2wl"] + params["b2wl"]) * d_p.reshape(-1, 1)
    if mse:
        out = jax.nn.sigmoid(out)
    return out


def kernel_mirror_reference(x, d_p, params, *, walk_len, emb_pro, less_para,
                            mse=True):
    """Pure-JAX mirror of the kernel's exact mixed-precision math (tight check)."""
    f32, bf16 = jnp.float32, jnp.bfloat16
    w = walk_len
    w1_eff, b1_eff, wmap_eff = _fold_linear1(params, emb_pro)
    xb = x.astype(bf16)

    def col(c):
        return xb[:, c:c + 1].astype(f32)

    xh0 = col(2 * w + 2) + col(3 * w + 2)
    xh1 = col(4 * w + 2) + col(5 * w + 2)
    acc = jnp.dot(xb, w1_eff, preferred_element_type=f32)
    if emb_pro == 1:
        acc = acc + xh0 * wmap_eff[0:1, :] + xh1 * wmap_eff[1:2, :]
    h = jnp.maximum(acc + b1_eff, 0.0).astype(bf16)
    if less_para == 0:
        acc = jnp.dot(h, params["w2"].astype(bf16), preferred_element_type=f32)
        h = jnp.maximum(acc + params["b2"], 0.0).astype(bf16)
    acc = jnp.dot(h, params["w3"].astype(bf16), preferred_element_type=f32)
    h = jnp.maximum(acc + params["b3"], 0.0).astype(bf16)
    acc = jnp.dot(h, params["w4"].astype(bf16), preferred_element_type=f32)
    h = jnp.maximum(acc + params["b4"], 0.0).astype(bf16)
    out5 = jnp.dot(h, params["w5"].astype(bf16),
                   preferred_element_type=f32) + params["b5"]
    alp = jnp.maximum(xh0 * params["w1wl"][0:1, :] + xh1 * params["w1wl"][1:2, :]
                      + params["b1wl"], 0.0)
    gate = jnp.dot(alp.astype(bf16), params["w2wl"].astype(bf16),
                   preferred_element_type=f32) + params["b2wl"]
    out = out5 + gate * d_p.reshape(-1, 1)
    if mse:
        out = jax.nn.sigmoid(out)
    return out


if __name__ == "__main__":
    INPUT_SIZE = 16   # hidden widths 320 / 320 / 160 / 16
    WALK_LEN = 2      # gathered columns 6, 8, 10, 12 < 16
    HEADS = 2         # forward gathers exactly 2 columns -> heads = 2
    N = 200           # not a tile multiple -> exercises padding + a 2-step grid

    key = jax.random.PRNGKey(0)
    kx, kd, kp = jax.random.split(key, 3)
    x = jax.random.normal(kx, (N, INPUT_SIZE), jnp.float32)
    d_p = jax.random.normal(kd, (N,), jnp.float32)
    params = init_params(kp, INPUT_SIZE, HEADS)

    for emb_pro, less_para in ((1, 0), (0, 1)):
        out = mlp_low_forward(x, d_p, params, walk_len=WALK_LEN,
                              emb_pro=emb_pro, less_para=less_para, mse=True)
        out = jax.block_until_ready(out)
        assert out.shape == (N, 1)

        # Tight check vs a reference that mirrors the kernel's mixed precision.
        ref_tight = kernel_mirror_reference(
            x, d_p, params, walk_len=WALK_LEN, emb_pro=emb_pro,
            less_para=less_para, mse=True)
        assert jnp.allclose(out, ref_tight, atol=2e-3, rtol=2e-3), (emb_pro, less_para)

        # Loose sanity check vs the faithful full-f32 reference.
        ref_f32 = reference_forward(
            x, d_p, params, walk_len=WALK_LEN, emb_pro=emb_pro,
            less_para=less_para, mse=True)
        assert jnp.allclose(out, ref_f32, atol=3e-2, rtol=3e-2), (emb_pro, less_para)

    print("KERNEL_OK")
</pallas_src>

<mosaic_0001>
module attributes {stable_mosaic.version = 11 : i64} {
  func.func @_mlp_low_kernel(%arg0: i32, %arg1: memref<128x16xbf16, #tpu.memory_space<vmem>>, %arg2: memref<1x1x128xf32, #tpu.memory_space<vmem>>, %arg3: memref<16x320xbf16, #tpu.memory_space<vmem>>, %arg4: memref<1x320xf32, #tpu.memory_space<vmem>>, %arg5: memref<2x320xf32, #tpu.memory_space<vmem>>, %arg6: memref<320x320xbf16, #tpu.memory_space<vmem>>, %arg7: memref<1x320xf32, #tpu.memory_space<vmem>>, %arg8: memref<320x160xbf16, #tpu.memory_space<vmem>>, %arg9: memref<1x160xf32, #tpu.memory_space<vmem>>, %arg10: memref<160x16xbf16, #tpu.memory_space<vmem>>, %arg11: memref<1x16xf32, #tpu.memory_space<vmem>>, %arg12: memref<1x16xbf16, #tpu.memory_space<vmem>>, %arg13: memref<1x1xf32, #tpu.memory_space<vmem>>, %arg14: memref<2x16xf32, #tpu.memory_space<vmem>>, %arg15: memref<1x16xf32, #tpu.memory_space<vmem>>, %arg16: memref<1x16xbf16, #tpu.memory_space<vmem>>, %arg17: memref<1x1xf32, #tpu.memory_space<vmem>>, %arg18: memref<1x1x128xf32, #tpu.memory_space<vmem>>) attributes {dimension_semantics = [#tpu.dimension_semantics<parallel>], iteration_bounds = array<i64: 2>, scalar_prefetch = 0 : i64, scratch_operands = 0 : i64, tpu.core_type = #tpu.core_type<tc>, window_params = [{transform_indices = @transform_0, window_bounds = array<i64: 128, 16>}, {transform_indices = @transform_1, window_bounds = array<i64: 1, 1, 128>}, {pipeline_mode = #tpu.pipeline_mode<synchronous>, transform_indices = @transform_2, window_bounds = array<i64: 16, 320>}, {pipeline_mode = #tpu.pipeline_mode<synchronous>, transform_indices = @transform_3, window_bounds = array<i64: 1, 320>}, {pipeline_mode = #tpu.pipeline_mode<synchronous>, transform_indices = @transform_4, window_bounds = array<i64: 2, 320>}, {pipeline_mode = #tpu.pipeline_mode<synchronous>, transform_indices = @transform_5, window_bounds = array<i64: 320, 320>}, {pipeline_mode = #tpu.pipeline_mode<synchronous>, transform_indices = @transform_6, window_bounds = array<i64: 1, 320>}, {pipeline_mode = #tpu.pipeline_mode<synchronous>, transform_indices = @transform_7, window_bounds = array<i64: 320, 160>}, {pipeline_mode = #tpu.pipeline_mode<synchronous>, transform_indices = @transform_8, window_bounds = array<i64: 1, 160>}, {pipeline_mode = #tpu.pipeline_mode<synchronous>, transform_indices = @transform_9, window_bounds = array<i64: 160, 16>}, {pipeline_mode = #tpu.pipeline_mode<synchronous>, transform_indices = @transform_10, window_bounds = array<i64: 1, 16>}, {pipeline_mode = #tpu.pipeline_mode<synchronous>, transform_indices = @transform_11, window_bounds = array<i64: 1, 16>}, {pipeline_mode = #tpu.pipeline_mode<synchronous>, transform_indices = @transform_12, window_bounds = array<i64: 1, 1>}, {pipeline_mode = #tpu.pipeline_mode<synchronous>, transform_indices = @transform_13, window_bounds = array<i64: 2, 16>}, {pipeline_mode = #tpu.pipeline_mode<synchronous>, transform_indices = @transform_14, window_bounds = array<i64: 1, 16>}, {pipeline_mode = #tpu.pipeline_mode<synchronous>, transform_indices = @transform_15, window_bounds = array<i64: 1, 16>}, {pipeline_mode = #tpu.pipeline_mode<synchronous>, transform_indices = @transform_16, window_bounds = array<i64: 1, 1>}, {transform_indices = @transform_17, window_bounds = array<i64: 1, 1, 128>}]} {
    %c0 = arith.constant 0 : index
    %c0_0 = arith.constant 0 : index
    %0 = vector.load %arg1[%c0, %c0_0] : memref<128x16xbf16, #tpu.memory_space<vmem>>, vector<128x16xbf16>
    %1 = vector.extract_strided_slice %0 {offsets = [0, 6], sizes = [128, 1], strides = [1, 1]} : vector<128x16xbf16> to vector<128x1xbf16>
    %2 = arith.extf %1 : vector<128x1xbf16> to vector<128x1xf32>
    %3 = vector.extract_strided_slice %0 {offsets = [0, 8], sizes = [128, 1], strides = [1, 1]} : vector<128x16xbf16> to vector<128x1xbf16>
    %4 = arith.extf %3 : vector<128x1xbf16> to vector<128x1xf32>
    %5 = arith.addf %2, %4 : vector<128x1xf32>
    %6 = vector.extract_strided_slice %0 {offsets = [0, 10], sizes = [128, 1], strides = [1, 1]} : vector<128x16xbf16> to vector<128x1xbf16>
    %7 = arith.extf %6 : vector<128x1xbf16> to vector<128x1xf32>
    %8 = vector.extract_strided_slice %0 {offsets = [0, 12], sizes = [128, 1], strides = [1, 1]} : vector<128x16xbf16> to vector<128x1xbf16>
    %9 = arith.extf %8 : vector<128x1xbf16> to vector<128x1xf32>
    %10 = arith.addf %7, %9 : vector<128x1xf32>
    %c0_1 = arith.constant 0 : index
    %c0_2 = arith.constant 0 : index
    %11 = vector.load %arg3[%c0_1, %c0_2] : memref<16x320xbf16, #tpu.memory_space<vmem>>, vector<16x320xbf16>
    %cst = arith.constant dense<0.000000e+00> : vector<128x320xf32>
    %12 = tpu.matmul %0, %11, %cst {dimension_numbers = #tpu.dot_dimension_numbers<[1], [0], [0], [1], [0, 0, 1, 1], [], []>} : vector<128x16xbf16>, vector<16x320xbf16>, vector<128x320xf32> -> vector<128x320xf32>
    %c0_3 = arith.constant 0 : index
    %c0_4 = arith.constant 0 : index
    %13 = vector.load %arg5[%c0_3, %c0_4] : memref<2x320xf32, #tpu.memory_space<vmem>>, vector<1x320xf32>
    %14 = vector.broadcast %5 : vector<128x1xf32> to vector<128x320xf32>
    %15 = vector.broadcast %13 : vector<1x320xf32> to vector<128x320xf32>
    %16 = arith.mulf %14, %15 : vector<128x320xf32>
    %17 = arith.addf %12, %16 : vector<128x320xf32>
    %c1 = arith.constant 1 : index
    %c0_5 = arith.constant 0 : index
    %18 = vector.load %arg5[%c1, %c0_5] : memref<2x320xf32, #tpu.memory_space<vmem>>, vector<1x320xf32>
    %19 = vector.broadcast %10 : vector<128x1xf32> to vector<128x320xf32>
    %20 = vector.broadcast %18 : vector<1x320xf32> to vector<128x320xf32>
    %21 = arith.mulf %19, %20 : vector<128x320xf32>
    %22 = arith.addf %17, %21 : vector<128x320xf32>
    %c0_6 = arith.constant 0 : index
    %c0_7 = arith.constant 0 : index
    %23 = vector.load %arg4[%c0_6, %c0_7] : memref<1x320xf32, #tpu.memory_space<vmem>>, vector<1x320xf32>
    %24 = vector.broadcast %23 : vector<1x320xf32> to vector<128x320xf32>
    %25 = arith.addf %22, %24 : vector<128x320xf32>
    %cst_8 = arith.constant 0.000000e+00 : f32
    %26 = vector.broadcast %cst_8 : f32 to vector<128x320xf32>
    %27 = arith.maximumf %25, %26 : vector<128x320xf32>
    %28 = arith.truncf %27 : vector<128x320xf32> to vector<128x320xbf16>
    %c0_9 = arith.constant 0 : index
    %c0_10 = arith.constant 0 : index
    %29 = vector.load %arg6[%c0_9, %c0_10] : memref<320x320xbf16, #tpu.memory_space<vmem>>, vector<320x320xbf16>
    %cst_11 = arith.constant dense<0.000000e+00> : vector<128x320xf32>
    %30 = tpu.matmul %28, %29, %cst_11 {dimension_numbers = #tpu.dot_dimension_numbers<[1], [0], [0], [1], [0, 0, 1, 1], [], []>} : vector<128x320xbf16>, vector<320x320xbf16>, vector<128x320xf32> -> vector<128x320xf32>
    %c0_12 = arith.constant 0 : index
    %c0_13 = arith.constant 0 : index
    %31 = vector.load %arg7[%c0_12, %c0_13] : memref<1x320xf32, #tpu.memory_space<vmem>>, vector<1x320xf32>
    %32 = vector.broadcast %31 : vector<1x320xf32> to vector<128x320xf32>
    %33 = arith.addf %30, %32 : vector<128x320xf32>
    %cst_14 = arith.constant 0.000000e+00 : f32
    %34 = vector.broadcast %cst_14 : f32 to vector<128x320xf32>
    %35 = arith.maximumf %33, %34 : vector<128x320xf32>
    %36 = arith.truncf %35 : vector<128x320xf32> to vector<128x320xbf16>
    %c0_15 = arith.constant 0 : index
    %c0_16 = arith.constant 0 : index
    %37 = vector.load %arg8[%c0_15, %c0_16] : memref<320x160xbf16, #tpu.memory_space<vmem>>, vector<320x160xbf16>
    %cst_17 = arith.constant dense<0.000000e+00> : vector<128x160xf32>
    %38 = tpu.matmul %36, %37, %cst_17 {dimension_numbers = #tpu.dot_dimension_numbers<[1], [0], [0], [1], [0, 0, 1, 1], [], []>} : vector<128x320xbf16>, vector<320x160xbf16>, vector<128x160xf32> -> vector<128x160xf32>
    %c0_18 = arith.constant 0 : index
    %c0_19 = arith.constant 0 : index
    %39 = vector.load %arg9[%c0_18, %c0_19] : memref<1x160xf32, #tpu.memory_space<vmem>>, vector<1x160xf32>
    %40 = vector.broadcast %39 : vector<1x160xf32> to vector<128x160xf32>
    %41 = arith.addf %38, %40 : vector<128x160xf32>
    %cst_20 = arith.constant 0.000000e+00 : f32
    %42 = vector.broadcast %cst_20 : f32 to vector<128x160xf32>
    %43 = arith.maximumf %41, %42 : vector<128x160xf32>
    %44 = arith.truncf %43 : vector<128x160xf32> to vector<128x160xbf16>
    %c0_21 = arith.constant 0 : index
    %c0_22 = arith.constant 0 : index
    %45 = vector.load %arg10[%c0_21, %c0_22] : memref<160x16xbf16, #tpu.memory_space<vmem>>, vector<160x16xbf16>
    %cst_23 = arith.constant dense<0.000000e+00> : vector<128x16xf32>
    %46 = tpu.matmul %44, %45, %cst_23 {dimension_numbers = #tpu.dot_dimension_numbers<[1], [0], [0], [1], [0, 0, 1, 1], [], []>} : vector<128x160xbf16>, vector<160x16xbf16>, vector<128x16xf32> -> vector<128x16xf32>
    %c0_24 = arith.constant 0 : index
    %c0_25 = arith.constant 0 : index
    %47 = vector.load %arg11[%c0_24, %c0_25] : memref<1x16xf32, #tpu.memory_space<vmem>>, vector<1x16xf32>
    %48 = vector.broadcast %47 : vector<1x16xf32> to vector<128x16xf32>
    %49 = arith.addf %46, %48 : vector<128x16xf32>
    %cst_26 = arith.constant 0.000000e+00 : f32
    %50 = vector.broadcast %cst_26 : f32 to vector<128x16xf32>
    %51 = arith.maximumf %49, %50 : vector<128x16xf32>
    %52 = arith.truncf %51 : vector<128x16xf32> to vector<128x16xbf16>
    %c0_27 = arith.constant 0 : index
    %c0_28 = arith.constant 0 : index
    %53 = vector.load %arg12[%c0_27, %c0_28] : memref<1x16xbf16, #tpu.memory_space<vmem>>, vector<1x16xbf16>
    %cst_29 = arith.constant dense<0.000000e+00> : vector<1x128xf32>
    %54 = tpu.matmul %53, %52, %cst_29 {dimension_numbers = #tpu.dot_dimension_numbers<[1], [1], [0], [0], [0, 0, 1, 0], [], []>} : vector<1x16xbf16>, vector<128x16xbf16>, vector<1x128xf32> -> vector<1x128xf32>
    %c0_30 = arith.constant 0 : index
    %c0_31 = arith.constant 0 : index
    %55 = vector.load %arg14[%c0_30, %c0_31] : memref<2x16xf32, #tpu.memory_space<vmem>>, vector<1x16xf32>
    %56 = vector.broadcast %5 : vector<128x1xf32> to vector<128x16xf32>
    %57 = vector.broadcast %55 : vector<1x16xf32> to vector<128x16xf32>
    %58 = arith.mulf %56, %57 : vector<128x16xf32>
    %c1_32 = arith.constant 1 : index
    %c0_33 = arith.constant 0 : index
    %59 = vector.load %arg14[%c1_32, %c0_33] : memref<2x16xf32, #tpu.memory_space<vmem>>, vector<1x16xf32>
    %60 = vector.broadcast %10 : vector<128x1xf32> to vector<128x16xf32>
    %61 = vector.broadcast %59 : vector<1x16xf32> to vector<128x16xf32>
    %62 = arith.mulf %60, %61 : vector<128x16xf32>
    %63 = arith.addf %58, %62 : vector<128x16xf32>
    %c0_34 = arith.constant 0 : index
    %c0_35 = arith.constant 0 : index
    %64 = vector.load %arg15[%c0_34, %c0_35] : memref<1x16xf32, #tpu.memory_space<vmem>>, vector<1x16xf32>
    %65 = vector.broadcast %64 : vector<1x16xf32> to vector<128x16xf32>
    %66 = arith.addf %63, %65 : vector<128x16xf32>
    %cst_36 = arith.constant 0.000000e+00 : f32
    %67 = vector.broadcast %cst_36 : f32 to vector<128x16xf32>
    %68 = arith.maximumf %66, %67 : vector<128x16xf32>
    %c0_37 = arith.constant 0 : index
    %c0_38 = arith.constant 0 : index
    %69 = vector.load %arg16[%c0_37, %c0_38] : memref<1x16xbf16, #tpu.memory_space<vmem>>, vector<1x16xbf16>
    %70 = arith.truncf %68 : vector<128x16xf32> to vector<128x16xbf16>
    %cst_39 = arith.constant dense<0.000000e+00> : vector<1x128xf32>
    %71 = tpu.matmul %69, %70, %cst_39 {dimension_numbers = #tpu.dot_dimension_numbers<[1], [1], [0], [0], [0, 0, 1, 0], [], []>} : vector<1x16xbf16>, vector<128x16xbf16>, vector<1x128xf32> -> vector<1x128xf32>
    %c0_40 = arith.constant 0 : index
    %c0_41 = arith.constant 0 : index
    %72 = vector.load %arg13[%c0_40, %c0_41] : memref<1x1xf32, #tpu.memory_space<vmem>>, vector<1x1xf32>
    %73 = vector.broadcast %72 : vector<1x1xf32> to vector<1x128xf32>
    %74 = arith.addf %54, %73 : vector<1x128xf32>
    %c0_42 = arith.constant 0 : index
    %c0_43 = arith.constant 0 : index
    %75 = vector.load %arg17[%c0_42, %c0_43] : memref<1x1xf32, #tpu.memory_space<vmem>>, vector<1x1xf32>
    %76 = vector.broadcast %75 : vector<1x1xf32> to vector<1x128xf32>
    %77 = arith.addf %71, %76 : vector<1x128xf32>
    %c0_44 = arith.constant 0 : index
    %c0_45 = arith.constant 0 : index
    %c0_46 = arith.constant 0 : index
    %78 = vector.load %arg2[%c0_44, %c0_45, %c0_46] : memref<1x1x128xf32, #tpu.memory_space<vmem>>, vector<1x1x128xf32>
    %79 = vector.shape_cast %78 : vector<1x1x128xf32> to vector<1x128xf32>
    %80 = arith.mulf %77, %79 : vector<1x128xf32>
    %81 = arith.addf %74, %80 : vector<1x128xf32>
    %82 = arith.negf %81 : vector<1x128xf32>
    %83 = math.exp %82 : vector<1x128xf32>
    %cst_47 = arith.constant 1.000000e+00 : f32
    %84 = vector.broadcast %cst_47 : f32 to vector<1x128xf32>
    %85 = arith.addf %84, %83 : vector<1x128xf32>
    %86 = arith.divf %84, %85 : vector<1x128xf32>
    %c0_48 = arith.constant 0 : index
    %c0_49 = arith.constant 0 : index
    %c0_50 = arith.constant 0 : index
    %87 = vector.load %arg18[%c0_48, %c0_49, %c0_50] : memref<1x1x128xf32, #tpu.memory_space<vmem>>, vector<1x1x128xf32>
    %88 = vector.shape_cast %87 : vector<1x1x128xf32> to vector<1x128xf32>
    %89 = vector.shape_cast %86 : vector<1x128xf32> to vector<1x1x128xf32>
    tpu.vector_store %arg18[%c0_48, %c0_49, %c0_50], %89 {strides = array<i32>} : memref<1x1x128xf32, #tpu.memory_space<vmem>>, vector<1x1x128xf32>,
    return
  }
  func.func @transform_0(%arg0: i32) -> (i32, i32) {
    %c0_i32 = arith.constant 0 : i32
    %c0_i32_0 = arith.constant 0 : i32
    return %arg0, %c0_i32 : i32, i32
  }
  func.func @transform_1(%arg0: i32) -> (i32, i32, i32) {
    %c0_i32 = arith.constant 0 : i32
    %c0_i32_0 = arith.constant 0 : i32
    %c0_i32_1 = arith.constant 0 : i32
    return %arg0, %c0_i32, %c0_i32_0 : i32, i32, i32
  }
  func.func @transform_2(%arg0: i32) -> (i32, i32) {
    %c0_i32 = arith.constant 0 : i32
    %c0_i32_0 = arith.constant 0 : i32
    %c0_i32_1 = arith.constant 0 : i32
    return %c0_i32, %c0_i32_0 : i32, i32
  }
  func.func @transform_3(%arg0: i32) -> (i32, i32) {
    %c0_i32 = arith.constant 0 : i32
    %c0_i32_0 = arith.constant 0 : i32
    %c0_i32_1 = arith.constant 0 : i32
    return %c0_i32, %c0_i32_0 : i32, i32
  }
  func.func @transform_4(%arg0: i32) -> (i32, i32) {
    %c0_i32 = arith.constant 0 : i32
    %c0_i32_0 = arith.constant 0 : i32
    %c0_i32_1 = arith.constant 0 : i32
    return %c0_i32, %c0_i32_0 : i32, i32
  }
  func.func @transform_5(%arg0: i32) -> (i32, i32) {
    %c0_i32 = arith.constant 0 : i32
    %c0_i32_0 = arith.constant 0 : i32
    %c0_i32_1 = arith.constant 0 : i32
    return %c0_i32, %c0_i32_0 : i32, i32
  }
  func.func @transform_6(%arg0: i32) -> (i32, i32) {
    %c0_i32 = arith.constant 0 : i32
    %c0_i32_0 = arith.constant 0 : i32
    %c0_i32_1 = arith.constant 0 : i32
    return %c0_i32, %c0_i32_0 : i32, i32
  }
  func.func @transform_7(%arg0: i32) -> (i32, i32) {
    %c0_i32 = arith.constant 0 : i32
    %c0_i32_0 = arith.constant 0 : i32
    %c0_i32_1 = arith.constant 0 : i32
    return %c0_i32, %c0_i32_0 : i32, i32
  }
  func.func @transform_8(%arg0: i32) -> (i32, i32) {
    %c0_i32 = arith.constant 0 : i32
    %c0_i32_0 = arith.constant 0 : i32
    %c0_i32_1 = arith.constant 0 : i32
    return %c0_i32, %c0_i32_0 : i32, i32
  }
  func.func @transform_9(%arg0: i32) -> (i32, i32) {
    %c0_i32 = arith.constant 0 : i32
    %c0_i32_0 = arith.constant 0 : i32
    %c0_i32_1 = arith.constant 0 : i32
    return %c0_i32, %c0_i32_0 : i32, i32
  }
  func.func @transform_10(%arg0: i32) -> (i32, i32) {
    %c0_i32 = arith.constant 0 : i32
    %c0_i32_0 = arith.constant 0 : i32
    %c0_i32_1 = arith.constant 0 : i32
    return %c0_i32, %c0_i32_0 : i32, i32
  }
  func.func @transform_11(%arg0: i32) -> (i32, i32) {
    %c0_i32 = arith.constant 0 : i32
    %c0_i32_0 = arith.constant 0 : i32
    %c0_i32_1 = arith.constant 0 : i32
    return %c0_i32, %c0_i32_0 : i32, i32
  }
  func.func @transform_12(%arg0: i32) -> (i32, i32) {
    %c0_i32 = arith.constant 0 : i32
    %c0_i32_0 = arith.constant 0 : i32
    %c0_i32_1 = arith.constant 0 : i32
    return %c0_i32, %c0_i32_0 : i32, i32
  }
  func.func @transform_13(%arg0: i32) -> (i32, i32) {
    %c0_i32 = arith.constant 0 : i32
    %c0_i32_0 = arith.constant 0 : i32
    %c0_i32_1 = arith.constant 0 : i32
    return %c0_i32, %c0_i32_0 : i32, i32
  }
  func.func @transform_14(%arg0: i32) -> (i32, i32) {
    %c0_i32 = arith.constant 0 : i32
    %c0_i32_0 = arith.constant 0 : i32
    %c0_i32_1 = arith.constant 0 : i32
    return %c0_i32, %c0_i32_0 : i32, i32
  }
  func.func @transform_15(%arg0: i32) -> (i32, i32) {
    %c0_i32 = arith.constant 0 : i32
    %c0_i32_0 = arith.constant 0 : i32
    %c0_i32_1 = arith.constant 0 : i32
    return %c0_i32, %c0_i32_0 : i32, i32
  }
  func.func @transform_16(%arg0: i32) -> (i32, i32) {
    %c0_i32 = arith.constant 0 : i32
    %c0_i32_0 = arith.constant 0 : i32
    %c0_i32_1 = arith.constant 0 : i32
    return %c0_i32, %c0_i32_0 : i32, i32
  }
  func.func @transform_17(%arg0: i32) -> (i32, i32, i32) {
    %c0_i32 = arith.constant 0 : i32
    %c0_i32_0 = arith.constant 0 : i32
    %c0_i32_1 = arith.constant 0 : i32
    return %arg0, %c0_i32, %c0_i32_0 : i32, i32, i32
  }
}

</mosaic_0001>

<bundles_post_ra>
// kernel: tpu_custom_call.1
= control target key start
LH: loop header
LB: loop body
LE: loop exit
PB: predicated region body
PF: predicated region fallthrough
CT: control target
= control target key end

     0   :  { %s5940_s0 = inlined_call_operand.vmem [shape: bf16[256,16], index: 0, kind: input, shape index: {}]   ;;  %s5941_s1 = inlined_call_operand.vmem [shape: f32[2,1,128], index: 1, kind: input, shape index: {}]   ;;  %s5942_s2 = inlined_call_operand.vmem [shape: bf16[16,320], index: 2, kind: input, shape index: {}]   ;;  %s5943_s3 = inlined_call_operand.vmem [shape: f32[1,320], index: 3, kind: input, shape index: {}]   ;;  %s5944_s4 = inlined_call_operand.vmem [shape: f32[2,320], index: 4, kind: input, shape index: {}]   ;;  %s5945_s5 = inlined_call_operand.vmem [shape: bf16[320,320], index: 5, kind: input, shape index: {}]   ;;  %s5946_s6 = inlined_call_operand.vmem [shape: f32[1,320], index: 6, kind: input, shape index: {}]   ;;  %s5947_s7 = inlined_call_operand.vmem [shape: bf16[320,160], index: 7, kind: input, shape index: {}]   ;;  %s5948_s8 = inlined_call_operand.vmem [shape: f32[1,160], index: 8, kind: input, shape index: {}]   ;;  %s5949_s9 = inlined_call_operand.vmem [shape: bf16[160,16], index: 9, kind: input, shape index: {}]   ;;  %s5950_s10 = inlined_call_operand.vmem [shape: f32[1,16], index: 10, kind: input, shape index: {}]   ;;  %s5951_s11 = inlined_call_operand.vmem [shape: bf16[1,16], index: 11, kind: input, shape index: {}]   ;;  %s5952_s12 = inlined_call_operand.<no memory space> [shape: f32[1,1], index: 12, kind: input, shape index: {}]   ;;  %s5953_s13 = inlined_call_operand.vmem [shape: f32[2,16], index: 13, kind: input, shape index: {}]   ;;  %s5954_s14 = inlined_call_operand.vmem [shape: f32[1,16], index: 14, kind: input, shape index: {}]   ;;  %s5955_s15 = inlined_call_operand.vmem [shape: bf16[1,16], index: 15, kind: input, shape index: {}]   ;;  %s5956_s17 = inlined_call_operand.hbm [shape: f32[2,1,128], index: 17, kind: output, shape index: {}]   ;;  %s5957_s16 = inlined_call_operand.<no memory space> [shape: f32[1,1], index: 16, kind: input, shape index: {}]  }
   0x1   :  { %5970 = sst [smem:[#allocation31_spill]] %s5940_s0  ;;  %v22_v0 = vstv %s5952_s12  ;;  %v24_v1 = vstv %s5957_s16 }
   0x2   :  { %5971 = sst [smem:[#allocation32_spill]] %s5941_s1  ;;  %23 = vst [vmem:[#allocation2] sm:$0x1] %v22_v0  ;;  %25 = vst [vmem:[#allocation3] sm:$0x1] %v24_v1 }
   0x3   :  { %5972 = sst [smem:[#allocation33_spill]] %s5942_s2 }
   0x4   :  { %26 = vsyncpa [#allocation5], 0 }
   0x5   :  { %28 = vsyncpa [#allocation5 + $0x1], 0  ;;  %s4466_s28 = smov 0   ;;  %s4468_s29 = smov 0  }
   0x6   :  { %s4470_s0 = smov 0   ;;  %s4472_s30 = smov 0  }
   0x7 LB: > { %5973 = sst [smem:[#allocation7_spill]] %s4357_s0  ;;  %s4487_s12 = sadd.s32 4294967295, %s4361_s30   ;;  %s4361_s30 = sphi %s4472_s30, %s6042_s30   ;;  %s4357_s0 = sphi %s4470_s0, %s6039_s0   ;;  %s4353_s29 = sphi %s4468_s29, %s6041_s29   ;;  %s4349_s28 = sphi %s4466_s28, %s6040_s28  }
   0x8   : > { %s3499_s16 = sadd.s32 4294967294, %s4361_s30   ;;  %s4491_s18 = sadd.s32 1, %s4361_s30  }
   0x9   : > { %s408_s19 = sadd.s32 1, %s4357_s0  ;;  %s405_s1 = ssub.s32 %s4361_s30, %s4491_s18 }
   0xa   : > { %p418_p0 = scmp.ne.s32.totalorder %s4357_s0, %s4353_s29  ;;  %p406_p1 = scmp.eq.s32.totalorder %s405_s1, 0 }
   0xb   : > { %p419_p2 = scmp.eq.s32.totalorder %s4487_s12, 1  ;;  %p424_p3 = scmp.ne.s32.totalorder %s4353_s29, %s4349_s28 }
   0xc   : > { %p425_p4 = scmp.eq.s32.totalorder %s3499_s16, 1  ;;  %p3502_p7 = scmp.ge.s32.totalorder %s4361_s30, 1 }
   0xd   : > { %s4502_s20 = scalar_select %p406_p1, %s4357_s0, %s408_s19  }
   0xe   : > { %p4504_p5 = por %p419_p2, %p418_p0  ;;  %p4508_p6 = por %p425_p4, %p424_p3 }
   0xf   : > { %5974 = sst [smem:[#allocation8_spill]] %s4502_s20  ;;  %p503_p8 = scmp.lt.s32.totalorder %s4361_s30, 3 }
  0x11   : > { %p504_p9 = pnand %p3502_p7, %p503_p8 }
  0x13   : > { %507 = sbr.rel (%p504_p9) target bundleno = 1444 (0x5a4), region = 88 }
  0x1a   : > { %s4515_s23 = sshll.u32 %s4487_s12, 4  ;;  %s5977_s2 = sld [smem:[#allocation33_spill]]  ;;  %v5959_v5 = vmov 0   ;;  %v4364_v6 = vmov 6   ;;  %vm884_vm0 = vcmask 130048   ;;  %vm1851_vm1 = vcmask 523264  }
  0x1b   : > { %p558_p10 = scmp.lt.s32.totalorder %s4515_s23, 31  ;;  %941 = vmatprep.mubr.bf16.mxu0 %v5959_v5  ;;  %4084 = vset.pattern.permute.xlu1 %v4364_v6  ;;  %s5978_s27 = sld [smem:[#allocation31_spill]]  ;;  %v4121_v39 = vld [vmem:[%s5945_s5] ss:$12 sps:$4 sm:$0xff]   ;;  %v4123_v40 = vld [vmem:[%s5945_s5 + $0x4] ss:$12 sps:$4 sm:$0xff]  }
  0x1c   : > { %4083 = vset.pattern.permute.xlu0 %v4364_v6  ;;  %s4365_s16 = smov 126   ;;  %v4124_v41 = vld [vmem:[%s5945_s5 + $0x18] ss:$12 sps:$4 sm:$0xff]   ;;  %v4126_v42 = vld [vmem:[%s5945_s5 + $0x1c] ss:$12 sps:$4 sm:$0xff]   ;;  %vm3005_vm2 = vcmask 261120  }
  0x1d   : > { %s559_s1 = scalar_select %p558_p10, %s4515_s23, 31  ;;  %v4127_v43 = vld [vmem:[%s5945_s5 + $0x30] ss:$12 sps:$4 sm:$0xff]   ;;  %v4129_v44 = vld [vmem:[%s5945_s5 + $0x34] ss:$12 sps:$4 sm:$0xff]   ;;  %vm4368_vm3 = vmmov 0  }
  0x1e   : > { %v4132_v45 = vld [vmem:[%s5945_s5 + $0x4c] ss:$12 sps:$4 sm:$0xff]   ;;  %v4130_v46 = vld [vmem:[%s5945_s5 + $0x48] ss:$12 sps:$4 sm:$0xff]   ;;  %v4135_v47 = vld [vmem:[%s5945_s5 + $0x64] ss:$12 sps:$4 sm:$0xff]  }
  0x1f   : > { %s3504_s24 = sshll.u32 %s559_s1, 2  ;;  %v4133_v48 = vld [vmem:[%s5945_s5 + $0x60] ss:$12 sps:$4 sm:$0xff]   ;;  %v4138_v49 = vld [vmem:[%s5945_s5 + $0x7c] ss:$12 sps:$4 sm:$0xff]   ;;  %p563_p11 = scmp.lt.s32.totalorder %s4487_s12, 1 }
  0x20   : > { %v4110_v2 = vld [vmem:[%s5977_s2 + $0x4] ss:$12 sps:$4 sm:$0xff]   ;;  %v4112_v3 = vld [vmem:[%s5977_s2 + $0x8] ss:$12 sps:$4 sm:$0xff]   ;;  %v4113_v4 = vld [vmem:[%s5977_s2] ss:$12 sps:$4 sm:$0xff]  }
  0x21   : > { %909 = vmatprep.subr.bf16.mxu0 %v4110_v2  ;;  %3788 = vmatprep.subr.bf16.mxu1 %v4112_v3  ;;  %s561_s20 = scalar_lea.vmem %s5978_s27, %s3504_s24  ;;  %v4148_v50 = vld [vmem:[%s5945_s5 + $0xc8] ss:$12 sps:$4 sm:$0xff]   ;;  %v4153_v52 = vld [vmem:[%s5945_s5 + $0xe0] ss:$12 sps:$4 sm:$0xff]   ;;  %v4136_v53 = vld [vmem:[%s5945_s5 + $0x78] ss:$12 sps:$4 sm:$0xff]  }
  0x22   : > { %910 = vmatpush1.bf16.msra.mxu0 %v4113_v4  ;;  %3789 = vmatpush3.bf16.msra.mxu1 %v4112_v3  ;;  %v4534_v7 = vld [vmem:[%s561_s20] sm:$0xff]   ;;  %v4536_v8 = vld [vmem:[%s561_s20 + $0x8] sm:$0xff]   ;;  %v4538_v9 = vld [vmem:[%s561_s20 + $0x10] sm:$0xff]   ;;  %s6044_s12 = smov (!%p563_p11, %s4487_s12), 1  ;;  %s6037_s25 = sld [smem:[#allocation32_spill]] }
  0x23   : > { %v583_v10 = vunpack.c.l.bf16 %v4534_v7  ;;  %v584_v11 = vunpack.c.h.bf16 %v4534_v7  ;;  %v585_v12 = vunpack.c.l.bf16 %v4536_v8  ;;  %v586_v13 = vunpack.c.h.bf16 %v4536_v8  ;;  %v4544_v14 = vld [vmem:[%s561_s20 + $0x18] sm:$0xff]   ;;  %v4548_v17 = vld [vmem:[%s561_s20 + $0x20] sm:$0xff]   ;;  %v4550_v18 = vld [vmem:[%s561_s20 + $0x28] sm:$0xff]   ;;  %3790 = vmatprep.mubr.msk.bf16.mxu1 %vm884_vm0, %v4534_v7  ;;  %1876 = vmatprep.subr.bf16.mxu0 %v4123_v40  ;;  %s4369_s24 = smov [#allocation4]  }
  0x24   : > { %v587_v15 = vunpack.c.l.bf16 %v4538_v9  ;;  %v588_v16 = vunpack.c.h.bf16 %v4538_v9  ;;  %v589_v20 = vunpack.c.l.bf16 %v4544_v14  ;;  %v590_v21 = vunpack.c.h.bf16 %v4544_v14  ;;  %v4566_v23 = vld [vmem:[%s561_s20 + $0x30] sm:$0xff]   ;;  %v4575_v27 = vld [vmem:[%s561_s20 + $0x38] sm:$0xff]   ;;  %3694 = vmatprep.subr.bf16.mxu1 %v4148_v50  ;;  %v4154_v54 = vld [vmem:[%s5945_s5 + $0x20] ss:$12 sps:$4 sm:$0xff]   ;;  %s5898_s20 = scalar_lea.hbm %s5956_s17, %s4515_s23 }
  0x25   : > { %v4043_v19 = vpack.i.bf16 %v584_v11, %v583_v10  ;;  %3516 = vmatmul.mubr.msk.bf16.vlgmr.msra.gmra.mrb[0].mxu0 %vm884_vm0, %v4534_v7  ;;  %v4048_v24 = vpack.i.bf16 %v586_v13, %v585_v12  ;;  %v591_v25 = vunpack.c.l.bf16 %v4548_v17  ;;  %v592_v26 = vunpack.c.h.bf16 %v4548_v17  ;;  %3791 = vmatmul.mubr.msk.bf16.vlgmr.msra.gmra.mrb[0].mxu1 %vm884_vm0, %v4536_v8  ;;  %v4149_v51 = vld [vmem:[%s5945_s5 + $0x8] ss:$12 sps:$4 sm:$0xff]   ;;  %v4158_v56 = vld [vmem:[%s5945_s5 + $0xf8] ss:$12 sps:$4 sm:$0xff]   ;;  %v4139_v57 = vld [vmem:[%s5945_s5 + $0x90] ss:$12 sps:$4 sm:$0xff]  }
  0x26   : > { %v4053_v22 = vpack.i.bf16 %v588_v16, %v587_v15  ;;  %951 = vmatprep.mubr.bf16.mxu0 %v5959_v5  ;;  %v4058_v28 = vpack.i.bf16 %v590_v21, %v589_v20  ;;  %v593_v29 = vunpack.c.l.bf16 %v4550_v18  ;;  %v594_v30 = vunpack.c.h.bf16 %v4550_v18  ;;  %3794 = vmatprep.mubr.msk.bf16.mxu1 %vm884_vm0, %v4538_v9  ;;  %v4141_v55 = vld [vmem:[%s5945_s5 + $0x94] ss:$12 sps:$4 sm:$0xff]   ;;  %v4159_v58 = vld [vmem:[%s5945_s5 + $0x38] ss:$12 sps:$4 sm:$0xff]   ;;  %v4163_v60 = vld [vmem:[%s5945_s5 + $0x110] ss:$12 sps:$4 sm:$0xff]  }
  0x27   : > { %4044 = vrot.lane.b32.xlu0 %v4043_v19, %s4365_s16  ;;  %v4063_v31 = vpack.i.bf16 %v592_v26, %v591_v25  ;;  %v595_v32 = vunpack.c.l.bf16 %v4566_v23  ;;  %v596_v33 = vunpack.c.h.bf16 %v4566_v23  ;;  %v597_v35 = vunpack.c.l.bf16 %v4575_v27  ;;  %1877 = vmatpush1.bf16.msra.mxu0 %v4121_v39  ;;  %v4144_v59 = vld [vmem:[%s5945_s5 + $0xac] ss:$12 sps:$4 sm:$0xff]   ;;  %v4142_v61 = vld [vmem:[%s5945_s5 + $0xa8] ss:$12 sps:$4 sm:$0xff]   ;;  %v4164_v62 = vld [vmem:[%s5945_s5 + $0x50] ss:$12 sps:$4 sm:$0xff]  }
  0x28   : > { %4054 = vrot.lane.b32.xlu1 %v4053_v22, %s4365_s16  ;;  %v4068_v34 = vpack.i.bf16 %v594_v30, %v593_v29  ;;  %v598_v36 = vunpack.c.h.bf16 %v4575_v27  ;;  %1878 = vmatprep.subr.bf16.mxu0 %v4126_v42  ;;  %v4147_v63 = vld [vmem:[%s5945_s5 + $0xc4] ss:$12 sps:$4 sm:$0xff]   ;;  %v4145_v0 = vld [vmem:[%s5945_s5 + $0xc0] ss:$12 sps:$4 sm:$0xff]   ;;  %v4152_v1 = vld [vmem:[%s5945_s5 + $0xdc] ss:$12 sps:$4 sm:$0xff]   ;;  %s565_s26 = scalar_lea.vmem %s6037_s25, %s6044_s12 }
  0x29   : > { %v4073_v37 = vpack.i.bf16 %v596_v33, %v595_v32  ;;  %3695 = vmatpush3.bf16.msra.mxu1 %v4149_v51  ;;  %v4150_v2 = vld [vmem:[%s5945_s5 + $0xd8] ss:$12 sps:$4 sm:$0xff]   ;;  %v4157_v3 = vld [vmem:[%s5945_s5 + $0xf4] ss:$12 sps:$4 sm:$0xff]   ;;  %v4155_v4 = vld [vmem:[%s5945_s5 + $0xf0] ss:$12 sps:$4 sm:$0xff]  }
  0x2a   : > { %v4078_v38 = vpack.i.bf16 %v598_v36, %v597_v35  ;;  %3696 = vmatprep.subr.bf16.mxu1 %v4153_v52  ;;  %v4162_v19 = vld [vmem:[%s5945_s5 + $0x10c] ss:$12 sps:$4 sm:$0xff]   ;;  %v4160_v22 = vld [vmem:[%s5945_s5 + $0x108] ss:$12 sps:$4 sm:$0xff]   ;;  %v4366_v42 = vmov 10   ;;  %s555_s12 = sand.u32 1, %s4353_s29  }
  0x2b   : > { %4049 = vrot.lane.b32.xlu0 %v4048_v24, %s4365_s16  ;;  %1879 = vmatpush1.bf16.msra.mxu0 %v4124_v41  ;;  %v4165_v39 = vld [vmem:[%s5945_s5 + $0x120] ss:$12 sps:$4 sm:$0xff]   ;;  %v4169_v7 = vld [vmem:[%s5945_s5 + $0x68] ss:$12 sps:$4 sm:$0xff]   ;;  %v4183_v52 = vld [vmem:[%s5945_s5 + $0x170] ss:$12 sps:$4 sm:$0xff]  }
  0x2c   : > { %4059 = vrot.lane.b32.xlu1 %v4058_v28, %s4365_s16  ;;  %1880 = vmatprep.subr.bf16.mxu0 %v4129_v44  ;;  %v4172_v40 = vld [vmem:[%s5945_s5 + $0x13c] ss:$12 sps:$4 sm:$0xff]   ;;  %v4173_v41 = vld [vmem:[%s5945_s5 + $0x140] ss:$12 sps:$4 sm:$0xff]   ;;  %s556_s27 = scalar_lea.vmem [#allocation4], %s555_s12  ;;  %s3423_s19 = scalar_lea.sflag [#allocation5], %s555_s12 }
  0x2d   : > { %3517 = vmatmul.mubr.msk.bf16.gmra.mrb[4].mxu0 %vm884_vm0, %v4536_v8  ;;  %3795 = vmatmul.mubr.msk.bf16.gmra.mrb[4].mxu1 %vm884_vm0, %v4544_v14  ;;  %v4174_v44 = vld [vmem:[%s5945_s5 + $0x80] ss:$12 sps:$4 sm:$0xff]   ;;  %v4184_v8 = vld [vmem:[%s5945_s5 + $0xb0] ss:$12 sps:$4 sm:$0xff]   ;;  %s4303_s25 = sshll.u32 %s4369_s24, 4  ;;  %s4304_s25 = int_to_ptr.vmem [resolvable:$false] %s4303_s25 }
  0x2e   : > { %961 = vmatprep.mubr.bf16.mxu0 %v5959_v5  ;;  %3798 = vmatprep.mubr.msk.bf16.mxu1 %vm884_vm0, %v4548_v17  ;;  %v4182_v51 = vld [vmem:[%s5945_s5 + $0x16c] ss:$12 sps:$4 sm:$0xff]  }
  0x2f   : > { %4064 = vrot.lane.b32.xlu0 %v4063_v31, %s4365_s16  ;;  %1881 = vmatpush1.bf16.msra.mxu0 %v4127_v43 }
  0x30   : > { %4069 = vrot.lane.b32.xlu1 %v4068_v34, %s4365_s16  ;;  %1882 = vmatprep.subr.bf16.mxu0 %v4132_v45  ;;  %v4177_v45 = vld [vmem:[%s5945_s5 + $0x154] ss:$12 sps:$4 sm:$0xff]  }
  0x31   : > { %3697 = vmatpush3.bf16.msra.mxu1 %v4154_v54 }
  0x32   : > { %3698 = vmatprep.subr.bf16.mxu1 %v4158_v56 }
  0x33   : > { %4074 = vrot.lane.b32.xlu0 %v4073_v37, %s4365_s16  ;;  %1883 = vmatpush1.bf16.msra.mxu0 %v4130_v46  ;;  %v4167_v37 = vld [vmem:[%s5945_s5 + $0x124] ss:$12 sps:$4 sm:$0xff]  }
  0x34   : > { %4079 = vrot.lane.b32.xlu1 %v4078_v38, %s4365_s16  ;;  %1884 = vmatprep.subr.bf16.mxu0 %v4135_v47  ;;  %v4168_v38 = vld [vmem:[%s5945_s5 + $0x128] ss:$12 sps:$4 sm:$0xff]   ;;  %v4178_v46 = vld [vmem:[%s5945_s5 + $0x158] ss:$12 sps:$4 sm:$0xff]   ;;  %s3435_s16 = sshll.u32 %s556_s27, 4  ;;  %s5900_s16 = int_to_ptr.vmem [resolvable:$true] %s3435_s16 }
  0x35   : > { %3518 = vmatmul.mubr.msk.bf16.gmra.mrb[8].mxu0 %vm884_vm0, %v4538_v9  ;;  %3799 = vmatmul.mubr.msk.bf16.gmra.mrb[8].mxu1 %vm884_vm0, %v4550_v18  ;;  %v4179_v47 = vld [vmem:[%s5945_s5 + $0x98] ss:$12 sps:$4 sm:$0xff]   ;;  %s4299_s1 = scalar_lea.vmem %s5900_s16, 16  ;;  %p4306_p1 = scmp.lt.s32.totalorder %s5900_s16, %s4304_s25 }
  0x36   : > { %971 = vmatprep.mubr.bf16.mxu0 %v5959_v5  ;;  %3802 = vmatprep.mubr.msk.bf16.mxu1 %vm884_vm0, %v4566_v23  ;;  %p4300_p12 = scmp.ne.s32.totalorder %s5900_s16, %s4299_s1 }
  0x37   : > { %1885 = vmatpush1.bf16.msra.mxu0 %v4133_v48  ;;  %3699 = vmatpush3.bf16.msra.mxu1 %v4159_v58 }
  0x38   : > { %1886 = vmatprep.subr.bf16.mxu0 %v4138_v49  ;;  %3700 = vmatprep.subr.bf16.mxu1 %v4163_v60  ;;  %p4301_p13 = pnand %p4300_p12, %p4504_p5 }
  0x3a   : > { %p4302_p0 = pneg %p4301_p13 }
  0x3b   : > { %1887 = vmatpush1.bf16.msra.mxu0 %v4136_v53  ;;  %3701 = vmatpush3.bf16.msra.mxu1 %v4164_v62 }
  0x3c   : > { %1888 = vmatprep.subr.bf16.mxu0 %v4141_v55  ;;  %3702 = vmatprep.subr.bf16.mxu1 %v4168_v38 }
  0x3d   : > { %3519 = vmatmul.mubr.msk.bf16.gmra.mrb[12].mxu0 %vm884_vm0, %v4544_v14  ;;  %3803 = vmatmul.mubr.msk.bf16.gmra.mrb[12].mxu1 %vm884_vm0, %v4575_v27 }
  0x3e   : > { %981 = vmatprep.mubr.bf16.mxu0 %v5959_v5 }
  0x3f   : > { %1889 = vmatpush1.bf16.msra.mxu0 %v4139_v57  ;;  %3703 = vmatpush3.bf16.msra.mxu1 %v4169_v7 }
  0x40   : > { %1890 = vmatprep.subr.bf16.mxu0 %v4144_v59  ;;  %3704 = vmatprep.subr.bf16.mxu1 %v4173_v41 }
  0x43   : > { %1891 = vmatpush1.bf16.msra.mxu0 %v4142_v61  ;;  %3705 = vmatpush3.bf16.msra.mxu1 %v4174_v44 }
  0x44   : > { %1892 = vmatprep.subr.bf16.mxu0 %v4147_v63  ;;  %3706 = vmatprep.subr.bf16.mxu1 %v4178_v46 }
  0x45   : > { %3520 = vmatmul.mubr.msk.bf16.gmra.mrb[16].mxu0 %vm884_vm0, %v4548_v17 }
  0x46   : > { %991 = vmatprep.mubr.bf16.mxu0 %v5959_v5 }
  0x47   : > { %1893 = vmatpush1.bf16.msra.mxu0 %v4145_v0  ;;  %3707 = vmatpush3.bf16.msra.mxu1 %v4179_v47 }
  0x48   : > { %1894 = vmatprep.subr.bf16.mxu0 %v4152_v1  ;;  %3708 = vmatprep.subr.bf16.mxu1 %v4183_v52 }
  0x4b   : > { %1895 = vmatpush1.bf16.msra.mxu0 %v4150_v2  ;;  %3709 = vmatpush3.bf16.msra.mxu1 %v4184_v8 }
  0x4c   : > { %1896 = vmatprep.subr.bf16.mxu0 %v4157_v3 }
  0x4d   : > { %3521 = vmatmul.mubr.msk.bf16.gmra.mrb[20].mxu0 %vm884_vm0, %v4550_v18 }
  0x4e   : > { %1001 = vmatprep.mubr.bf16.mxu0 %v5959_v5 }
  0x4f   : > { %1897 = vmatpush1.bf16.msra.mxu0 %v4155_v4 }
  0x50   : > { %1898 = vmatprep.subr.bf16.mxu0 %v4162_v19 }
  0x53   : > { %1899 = vmatpush1.bf16.msra.mxu0 %v4160_v22 }
  0x54   : > { %1900 = vmatprep.subr.bf16.mxu0 %v4167_v37 }
  0x55   : > { %3522 = vmatmul.mubr.msk.bf16.gmra.mrb[24].mxu0 %vm884_vm0, %v4566_v23 }
  0x56   : > { %1011 = vmatprep.mubr.bf16.mxu0 %v5959_v5 }
  0x57   : > { %1901 = vmatpush1.bf16.msra.mxu0 %v4165_v39 }
  0x58   : > { %1902 = vmatprep.subr.bf16.mxu0 %v4172_v40 }
  0x5d   : > { %3523 = vmatmul.mubr.msk.bf16.gmra.mrb[28].mxu0 %vm884_vm0, %v4575_v27 }
  0x99   : > { %v4045_v24 = vpop.permute.xlu0 %4044 }
  0x9a   : > { %v4283_v28 = vadd.high.f32.bf16 %v584_v11, %v4045_v24  ;;  %v4284_v31 = vadd.low.f32.bf16 %v583_v10, %v4045_v24  ;;  %v4055_v10 = vpop.permute.xlu1 %4054  ;;  %v4170_v11 = vld [vmem:[%s5945_s5 + $0x138] ss:$12 sps:$4 sm:$0xff]  }
  0x9b   : > { %1903 = vmatpush1.bf16.msra.mxu0 %v4170_v11  ;;  %v4286_v48 = vadd.low.f32.bf16 %v587_v15, %v4055_v10  ;;  %v4180_v15 = vld [vmem:[%s5945_s5 + $0x168] ss:$12 sps:$4 sm:$0xff]  }
  0x9c   : > { %691 = vperm.xlu1 %4084, %v4283_v28   ;;  %686 = vperm.xlu0 %4083, %v4284_v31  }
  0x9d   : > { %v4050_v34 = vpop.permute.xlu0 %4049  ;;  %1904 = vmatprep.subr.bf16.mxu0 %v4177_v45 }
  0x9e   : > { %v4285_v43 = vadd.low.f32.bf16 %v585_v12, %v4050_v34  ;;  %v4175_v12 = vld [vmem:[%s5945_s5 + $0x150] ss:$12 sps:$4 sm:$0xff]   ;;  %v4287_v49 = vadd.high.f32.bf16 %v586_v13, %v4050_v34  ;;  %v4060_v50 = vpop.permute.xlu1 %4059  ;;  %v4288_v13 = vadd.high.f32.bf16 %v588_v16, %v4055_v10  ;;  %v765_v34 = vlaneseq }
  0x9f   : > { %1905 = vmatpush1.bf16.msra.mxu0 %v4175_v12  ;;  %v4289_v54 = vadd.low.f32.bf16 %v589_v20, %v4060_v50  ;;  %v683_v12 = vld [vmem:[%s5944_s4] ss:$2 sm:$0x7] }
  0xa0   : > { %4085 = vset.pattern.permute.xlu1 %v4366_v42  ;;  %4086 = vset.pattern.permute.xlu0 %v4366_v42  ;;  %v766_v39 = vshrl.u32 %v765_v34, 7  ;;  %v4967_v34 = vld [vmem:[%s5953_s13 + $0x1] ss:$0 sm:$0xff] }
  0xa1   : > { %1122 = vperm.xlu1 %4085, %v4284_v31   ;;  %1126 = vperm.xlu0 %4086, %v4283_v28   ;;  %v4065_v53 = vpop.permute.xlu0 %4064 }
  0xa2   : > { %1906 = vmatprep.subr.bf16.mxu0 %v4182_v51  ;;  %v4290_v9 = vadd.low.f32.bf16 %v591_v25, %v4065_v53  ;;  %v4070_v16 = vpop.permute.xlu1 %4069  ;;  %v4291_v55 = vadd.high.f32.bf16 %v592_v26, %v4065_v53  ;;  %v4293_v25 = vadd.high.f32.bf16 %v590_v21, %v4060_v50  ;;  %v4187_v21 = vld [vmem:[%s5945_s5 + $0x184] ss:$12 sps:$4 sm:$0xff]   ;;  %v4906_v44 = vsub.s32 1, %v766_v39 }
  0xa3   : > { %1907 = vmatpush1.bf16.msra.mxu0 %v4180_v15  ;;  %v4292_v20 = vadd.low.f32.bf16 %v593_v29, %v4070_v16  ;;  %v4297_v23 = vadd.high.f32.bf16 %v594_v30, %v4070_v16  ;;  %v4908_v45 = vsub.s32 2, %v766_v39  ;;  %v3532_v51 = vld [vmem:[%s5944_s4 + $0x1] ss:$2 sm:$0x7]  ;;  %v4944_v16 = vld [vmem:[%s5953_s13] ss:$0 sm:$0xff] }
  0xa4   : > { %1989 = vmatprep.subr.bf16.mxu0 %v4187_v21  ;;  %5986 = vst [vmem:[#allocation16_spill] sm:$0xff] %v4906_v44 }
  0xa5   : > { %4087 = vset.pattern.permute.xlu1 %v4364_v6  ;;  %1130 = vperm.xlu0 %4086, %v4285_v43   ;;  %v4075_v56 = vpop.permute.xlu0 %4074  ;;  %5987 = vst [vmem:[#allocation17_spill] sm:$0xff] %v4908_v45  ;;  %v4924_v50 = vrot.slane %v683_v12, %v4908_v45 }
  0xa6   : > { %696 = vperm.xlu1 %4087, %v4285_v43   ;;  %v4294_v57 = vadd.low.f32.bf16 %v595_v32, %v4075_v56  ;;  %v4080_v17 = vpop.permute.xlu1 %4079  ;;  %v4295_v26 = vadd.high.f32.bf16 %v596_v33, %v4075_v56  ;;  %v4904_v43 = vsub.s32 0, %v766_v39 }
  0xa7   : > { %v4296_v14 = vadd.low.f32.bf16 %v597_v35, %v4080_v17  ;;  %v4298_v29 = vadd.high.f32.bf16 %v598_v36, %v4080_v17  ;;  %v4855_v36 = vld [vmem:[%s5945_s5 + $0x188] ss:$12 sps:$4 sm:$0xff]  }
  0xa8   : > { %3806 = vmatprep.subr.bf16.mxu1 %v4855_v36  ;;  %5985 = vst [vmem:[#allocation15_spill] sm:$0xff] %v4904_v43 }
  0xa9   : > { %4089 = vset.pattern.permute.xlu0 %v4364_v6 }
  0xaa   : > { %701 = vperm.xlu1 %4087, %v4287_v49   ;;  %706 = vperm.xlu0 %4089, %v4286_v48  }
  0xae   : > { %4088 = vset.pattern.permute.xlu1 %v4366_v42  ;;  %4092 = vset.pattern.permute.xlu0 %v4366_v42 }
  0xaf   : > { %1134 = vperm.xlu1 %4088, %v4287_v49   ;;  %1142 = vperm.xlu0 %4092, %v4288_v13   ;;  %v4921_v49 = vrot.slane %v683_v12, %v4906_v44 }
  0xb3   : > { %4090 = vset.pattern.permute.xlu1 %v4364_v6  ;;  %1146 = vperm.xlu0 %4092, %v4289_v54  }
  0xb4   : > { %711 = vperm.xlu1 %4090, %v4288_v13  }
  0xb7   : > { %4095 = vset.pattern.permute.xlu0 %v4364_v6 }
  0xb8   : > { %4091 = vset.pattern.permute.xlu1 %v4366_v42  ;;  %726 = vperm.xlu0 %4095, %v4290_v9  }
  0xb9   : > { %1138 = vperm.xlu1 %4091, %v4286_v48   ;;  %v4918_v48 = vrot.slane %v683_v12, %v4904_v43 }
  0xbc   : > { %4098 = vset.pattern.permute.xlu0 %v4366_v42 }
  0xbd   : > { %4093 = vset.pattern.permute.xlu1 %v4364_v6  ;;  %1158 = vperm.xlu0 %4098, %v4291_v55  }
  0xbe   : > { %716 = vperm.xlu1 %4093, %v4289_v54   ;;  %v4936_v54 = vrot.slane %v3532_v51, %v4904_v43 }
  0xc1   : > { %1162 = vperm.xlu0 %4098, %v4292_v20  }
  0xc2   : > { %721 = vperm.xlu1 %4093, %v4293_v25  }
  0xc5   : > { %4101 = vset.pattern.permute.xlu0 %v4364_v6 }
  0xc6   : > { %4094 = vset.pattern.permute.xlu1 %v4366_v42  ;;  %746 = vperm.xlu0 %4101, %v4294_v57  }
  0xc7   : > { %1150 = vperm.xlu1 %4094, %v4293_v25   ;;  %v4950_v25 = vrot.slane %v3532_v51, %v4906_v44 }
  0xca   : > { %4104 = vset.pattern.permute.xlu0 %v4366_v42 }
  0xcb   : > { %4096 = vset.pattern.permute.xlu1 %v4364_v6  ;;  %1174 = vperm.xlu0 %4104, %v4295_v26  }
  0xcc   : > { %731 = vperm.xlu1 %4096, %v4291_v55  }
  0xcf   : > { %1178 = vperm.xlu0 %4104, %v4296_v14  }
  0xd0   : > { %4097 = vset.pattern.permute.xlu1 %v4366_v42 }
  0xd1   : > { %1154 = vperm.xlu1 %4097, %v4290_v9   ;;  %v1297_v9 = vld [vmem:[%s5943_s3] sm:$0x7] }
  0xd3   : > { %4107 = vset.pattern.permute.xlu0 %v5959_v5 }
  0xd5   : > { %4099 = vset.pattern.permute.xlu1 %v4364_v6 }
  0xd6   : > { %736 = vperm.xlu1 %4099, %v4292_v20  }
  0xda   : > { %741 = vperm.xlu1 %4099, %v4297_v23  }
  0xde   : > { %4100 = vset.pattern.permute.xlu1 %v4366_v42 }
  0xdf   : > { %1166 = vperm.xlu1 %4100, %v4297_v23   ;;  %v4959_v23 = vrot.slane %v1297_v9, %v4904_v43 }
  0xe3   : > { %4102 = vset.pattern.permute.xlu1 %v4364_v6 }
  0xe4   : > { %751 = vperm.xlu1 %4102, %v4295_v26  }
  0xe8   : > { %4103 = vset.pattern.permute.xlu1 %v4366_v42 }
  0xe9   : > { %1170 = vperm.xlu1 %4103, %v4294_v57  }
  0xed   : > { %4105 = vset.pattern.permute.xlu1 %v4364_v6 }
  0xee   : > { %756 = vperm.xlu1 %4105, %v4296_v14   ;;  %v4956_v14 = vrot.slane %v3532_v51, %v4908_v45  ;;  %v4972_v51 = vrot.slane %v1297_v9, %v4906_v44 }
  0xf2   : > { %761 = vperm.xlu1 %4105, %v4298_v29  }
  0xf6   : > { %4106 = vset.pattern.permute.xlu1 %v4366_v42 }
  0xf7   : > { %1182 = vperm.xlu1 %4106, %v4298_v29   ;;  %v4962_v29 = vrot.slane %v1297_v9, %v4908_v45 }
  0xf8   : > { %v4839_v18 = vpop.f32.mrb[0].mxu0  ;;  %v4843_v32 = vpop.f32.mrb[0].mxu1 }
  0xf9   : > { %v4841_v30 = vpop.f32.mrb[1].mxu0  ;;  %v1056_v35 = vpop.f32.mrb[1].mxu1 }
  0xfa   : > { %v4845_v33 = vpop.f32.mrb[2].mxu0  ;;  %v4849_v6 = vpop.f32.mrb[2].mxu1 }
  0xfb   : > { %v4847_v58 = vpop.f32.mrb[3].mxu0  ;;  %4108 = vset.pattern.permute.xlu1 %v5959_v5  ;;  %v1059_v27 = vpop.f32.mrb[3].mxu1 }
 0x100   : > { %v4858_v59 = vpop.f32.mrb[4].mxu0  ;;  %v4864_v62 = vpop.f32.mrb[4].mxu1 }
 0x101   : > { %v4860_v60 = vpop.f32.mrb[5].mxu0  ;;  %v4868_v0 = vpop.f32.mrb[5].mxu1 }
 0x102   : > { %v4862_v61 = vpop.f32.mrb[6].mxu0  ;;  %v4870_v1 = vpop.f32.mrb[6].mxu1 }
 0x103   : > { %v4866_v63 = vpop.f32.mrb[7].mxu0  ;;  %v4872_v2 = vpop.f32.mrb[7].mxu1 }
 0x108   : > { %v4874_v3 = vpop.f32.mrb[8].mxu0  ;;  %v4880_v22 = vpop.f32.mrb[8].mxu1 }
 0x109   : > { %v4876_v4 = vpop.f32.mrb[9].mxu0  ;;  %5979 = vst [vmem:[#allocation9_spill] sm:$0xff] %v4880_v22  ;;  %v4884_v28 = vpop.f32.mrb[9].mxu1 }
 0x10a   : > { %v4878_v19 = vpop.f32.mrb[10].mxu0  ;;  %v4886_v31 = vpop.f32.mrb[10].mxu1 }
 0x10b   : > { %v4882_v24 = vpop.f32.mrb[11].mxu0  ;;  %5980 = vst [vmem:[#allocation10_spill] sm:$0xff] %v4886_v31  ;;  %v4888_v37 = vpop.f32.mrb[11].mxu1 }
 0x10c   : > { %5981 = vst [vmem:[#allocation11_spill] sm:$0xff] %v4888_v37 }
 0x110   : > { %v4890_v38 = vpop.f32.mrb[12].mxu0  ;;  %v4896_v11 = vpop.f32.mrb[12].mxu1 }
 0x111   : > { %v4892_v7 = vpop.f32.mrb[13].mxu0  ;;  %5982 = vst [vmem:[#allocation12_spill] sm:$0xff] %v4896_v11  ;;  %v4900_v41 = vpop.f32.mrb[13].mxu1 }
 0x112   : > { %v4894_v10 = vpop.f32.mrb[14].mxu0  ;;  %5983 = vst [vmem:[#allocation13_spill] sm:$0xff] %v4900_v41  ;;  %v4902_v42 = vpop.f32.mrb[14].mxu1 }
 0x113   : > { %v4898_v40 = vpop.f32.mrb[15].mxu0  ;;  %5984 = vst [vmem:[#allocation14_spill] sm:$0xff] %v4902_v42  ;;  %v4910_v46 = vpop.f32.mrb[15].mxu1 }
 0x114   : > { %5988 = vst [vmem:[#allocation18_spill] sm:$0xff] %v4910_v46 }
 0x118   : > { %v4915_v47 = vpop.f32.mrb[16].mxu0 }
 0x119   : > { %v4929_v52 = vpop.f32.mrb[17].mxu0 }
 0x11a   : > { %v4931_v15 = vpop.f32.mrb[18].mxu0 }
 0x11b   : > { %v4933_v8 = vpop.f32.mrb[19].mxu0  ;;  %v692_v13 = vpop.permute.xlu1 %691 }
 0x11c   : > { %5989 = vst [vmem:[#allocation19_spill] sm:$0xff] %v4933_v8  ;;  %v687_v53 = vpop.permute.xlu0 %686  ;;  %v783_v57 = vmul.f32 %v4918_v48, %v692_v13  ;;  %v784_v17 = vmul.f32 %v4921_v49, %v692_v13  ;;  %v785_v26 = vmul.f32 %v4924_v50, %v692_v13  ;;  %v3158_v39 = vmul.f32 %v4944_v16, %v692_v13 }
 0x11d   : > { %v780_v55 = vmul.f32 %v4918_v48, %v687_v53  ;;  %v781_v56 = vmul.f32 %v4921_v49, %v687_v53  ;;  %v782_v20 = vmul.f32 %v4924_v50, %v687_v53  ;;  %v3157_v12 = vmul.f32 %v4944_v16, %v687_v53 }
 0x11e   : > { %v1060_v5 = vadd.f32 %v1059_v27, %v785_v26  ;;  %v948_v45 = vadd.f32 %v4845_v33, %v783_v57  ;;  %v950_v42 = vadd.f32 %v4847_v58, %v784_v17 }
 0x11f   : > { %v1057_v21 = vadd.f32 %v1056_v35, %v782_v20  ;;  %v944_v20 = vadd.f32 %v4839_v18, %v780_v55  ;;  %v946_v43 = vadd.f32 %v4841_v30, %v781_v56 }
 0x120   : > { %v4974_v35 = vpop.f32.mrb[20].mxu0  ;;  %v1123_v11 = vpop.permute.xlu1 %1122 }
 0x121   : > { %5990 = vst [vmem:[#allocation20_spill] sm:$0xff] %v4974_v35  ;;  %v1127_v46 = vpop.permute.xlu0 %1126  ;;  %v1201_v13 = vmul.f32 %v4936_v54, %v1123_v11  ;;  %v1202_v53 = vmul.f32 %v4950_v25, %v1123_v11  ;;  %v1203_v27 = vmul.f32 %v4956_v14, %v1123_v11  ;;  %v3178_v9 = vmul.f32 %v4967_v34, %v1123_v11  ;;  %v4984_v26 = vpop.f32.mrb[21].mxu0 }
 0x122   : > { %5991 = vst [vmem:[#allocation21_spill] sm:$0xff] %v4984_v26  ;;  %v1204_v18 = vmul.f32 %v4936_v54, %v1127_v46  ;;  %v1205_v30 = vmul.f32 %v4950_v25, %v1127_v46  ;;  %v1206_v33 = vmul.f32 %v4956_v14, %v1127_v46  ;;  %v3179_v58 = vmul.f32 %v4967_v34, %v1127_v46  ;;  %v4990_v55 = vpop.f32.mrb[22].mxu0 }
 0x123   : > { %v1249_v56 = vadd.f32 %v1201_v13, %v944_v20  ;;  %v1250_v57 = vadd.f32 %v1202_v53, %v946_v43  ;;  %v1251_v17 = vadd.f32 %v1203_v27, %v1057_v21  ;;  %v4992_v44 = vadd.f32 %v3178_v9, %v3157_v12  ;;  %v4994_v31 = vpop.f32.mrb[23].mxu0 }
 0x124   : > { %v1252_v11 = vadd.f32 %v1204_v18, %v948_v45  ;;  %v1253_v35 = vadd.f32 %v1205_v30, %v950_v42  ;;  %v1254_v26 = vadd.f32 %v1206_v33, %v1060_v5  ;;  %v4996_v22 = vadd.f32 %v3179_v58, %v3158_v39 }
 0x125   : > { %v1131_v41 = vpop.permute.xlu0 %1130  ;;  %v1314_v37 = vadd.f32 %v4959_v23, %v1249_v56  ;;  %v5000_v8 = vadd.f32 %v4962_v29, %v1251_v17  ;;  %v697_v46 = vpop.permute.xlu1 %696  ;;  %v1315_v17 = vadd.f32 %v4972_v51, %v1250_v57 }
 0x126   : > { %5992 = vst [vmem:[#allocation22_spill] sm:$0xff] %v4996_v22  ;;  %v1209_v20 = vmul.f32 %v4956_v14, %v1131_v41  ;;  %v3180_v43 = vmul.f32 %v4967_v34, %v1131_v41  ;;  %v1317_v21 = vadd.f32 %v4959_v23, %v1252_v11  ;;  %v5006_v12 = vadd.f32 %v4962_v29, %v1254_v26 }
 0x127   : > { %v788_v5 = vmul.f32 %v4924_v50, %v697_v46  ;;  %v3159_v42 = vmul.f32 %v4944_v16, %v697_v46  ;;  %v1362_v45 = vmax.f32 %v1314_v37, 0.0  ;;  %v786_v39 = vmul.f32 %v4918_v48, %v697_v46 }
 0x128   : > { %v1207_v13 = vmul.f32 %v4936_v54, %v1131_v41  ;;  %v787_v53 = vmul.f32 %v4921_v49, %v697_v46  ;;  %v5013_v27 = vpop.f32.mrb[24].mxu0  ;;  %v1365_v9 = vmax.f32 %v1317_v21, 0.0  ;;  %v1208_v26 = vmul.f32 %v4950_v25, %v1131_v41 }
 0x129   : > { %v1065_v18 = vadd.f32 %v4843_v32, %v788_v5  ;;  %v5016_v30 = vadd.f32 %v3180_v43, %v3159_v42  ;;  %v5019_v33 = vpop.f32.mrb[25].mxu0  ;;  %v954_v58 = vadd.f32 %v4858_v59, %v786_v39  ;;  %v702_v56 = vpop.permute.xlu1 %701  ;;  %v1318_v11 = vadd.f32 %v4972_v51, %v1253_v35 }
 0x12a   : > { %v956_v37 = vadd.f32 %v4860_v60, %v787_v53  ;;  %v707_v46 = vpop.permute.xlu0 %706  ;;  %v791_v21 = vmul.f32 %v4924_v50, %v702_v56  ;;  %v789_v32 = vmul.f32 %v4918_v48, %v702_v56  ;;  %v5027_v43 = vpop.f32.mrb[26].mxu0  ;;  %v790_v42 = vmul.f32 %v4921_v49, %v702_v56 }
 0x12b   : > { %5993 = vst [vmem:[#allocation23_spill] sm:$0xff] %v5016_v30  ;;  %v1257_v22 = vadd.f32 %v1209_v20, %v1065_v18  ;;  %v1255_v41 = vadd.f32 %v1207_v13, %v954_v58  ;;  %v1363_v59 = vmax.f32 %v1315_v17, 0.0  ;;  %v5030_v39 = vpop.f32.mrb[27].mxu0  ;;  %v1366_v57 = vmax.f32 %v1318_v11, 0.0 }
 0x12c   : > { %v1256_v5 = vadd.f32 %v1208_v26, %v956_v37  ;;  %5994 = vst [vmem:[#allocation24_spill] sm:$0xff] %v5030_v39  ;;  %v1068_v35 = vadd.f32 %v4849_v6, %v791_v21  ;;  %v1410_v18 = vpack.c.bf16 %v1365_v9, %v1362_v45  ;;  %v3160_v13 = vmul.f32 %v4944_v16, %v702_v56  ;;  %v4185_v6 = vld [vmem:[%s5945_s5 + $0x180] ss:$12 sps:$4 sm:$0xff]  }
 0x12d   : > { %v5033_v60 = vadd.f32 %v4962_v29, %v1257_v22  ;;  %v5037_v20 = vadd.f32 %v4959_v23, %v1255_v41  ;;  %v958_v26 = vadd.f32 %v4862_v61, %v789_v32  ;;  %v960_v58 = vadd.f32 %v4866_v63, %v790_v42  ;;  %v4190_v61 = vld [vmem:[%s5945_s5 + $0x19c] ss:$12 sps:$4 sm:$0xff]  }
 0x12e   : > { %v5040_v53 = vadd.f32 %v4972_v51, %v1256_v5  ;;  %v1411_v37 = vpack.c.bf16 %v1366_v57, %v1363_v59  ;;  %v1135_v17 = vpop.permute.xlu1 %1134  ;;  %v792_v45 = vmul.f32 %v4918_v48, %v707_v46  ;;  %v1143_v9 = vpop.permute.xlu0 %1142  ;;  %v5061_v5 = vmul.f32 %v4944_v16, %v707_v46 }
 0x12f   : > { %v1370_v22 = vmax.f32 %v5033_v60, 0.0  ;;  %v1210_v11 = vmul.f32 %v4936_v54, %v1135_v17  ;;  %v1211_v21 = vmul.f32 %v4950_v25, %v1135_v17  ;;  %v1212_v32 = vmul.f32 %v4956_v14, %v1135_v17 }
 0x130   : > { %v5055_v63 = vpop.f32.mrb[28].mxu0  ;;  %1908 = vmatprep.mubr.bf16.mxu0 %v1411_v37  ;;  %2134 = vmatprep.mubr.bf16.mxu1 %v1411_v37  ;;  %v3181_v41 = vmul.f32 %v4967_v34, %v1135_v17  ;;  %v1369_v59 = vmax.f32 %v5040_v53, 0.0  ;;  %v4198_v37 = vld [vmem:[%s5945_s5 + $0x1a0] ss:$12 sps:$4 sm:$0xff]   ;;  %v794_v39 = vmul.f32 %v4924_v50, %v707_v46  ;;  %v4188_v53 = vld [vmem:[%s5945_s5 + $0x198] ss:$12 sps:$4 sm:$0xff]  }
 0x131   : > { %5995 = vst [vmem:[#allocation25_spill] sm:$0xff] %v5055_v63  ;;  %v5063_v42 = vpop.f32.mrb[29].mxu0  ;;  %1909 = vmatmul.mubr.bf16.vlgmr.msra.gmra.mrb[32].mxu0 %v1410_v18  ;;  %2135 = vmatmul.mubr.bf16.vlgmr.msra.gmra.mrb[16].mxu1 %v1410_v18  ;;  %v1258_v60 = vadd.f32 %v1210_v11, %v958_v26  ;;  %v1259_v57 = vadd.f32 %v1211_v21, %v960_v58 }
 0x132   : > { %5996 = vst [vmem:[#allocation26_spill] sm:$0xff] %v5063_v42  ;;  %v793_v63 = vmul.f32 %v4921_v49, %v707_v46  ;;  %v5067_v56 = vpop.f32.mrb[30].mxu0  ;;  %v1260_v17 = vadd.f32 %v1212_v32, %v1068_v35  ;;  %v5072_v30 = vadd.f32 %v3181_v41, %v3160_v13  ;;  %v3183_v42 = vmul.f32 %v4967_v34, %v1143_v9  ;;  %v5085_v21 = vpop.permute.xlu0 %1146  ;;  %v4193_v46 = vld [vmem:[%s5945_s5 + $0x1b4] ss:$12 sps:$4 sm:$0xff]  }
 0x133   : > { %5997 = vst [vmem:[#allocation27_spill] sm:$0xff] %v5067_v56  ;;  %1990 = vmatpush1.bf16.msra.mxu0 %v4185_v6  ;;  %v5079_v18 = vpop.f32.mrb[31].mxu0  ;;  %v964_v26 = vadd.f32 %v4874_v3, %v792_v45  ;;  %v712_v11 = vpop.permute.xlu1 %711  ;;  %v1216_v35 = vmul.f32 %v4936_v54, %v1143_v9  ;;  %v1218_v13 = vmul.f32 %v4956_v14, %v1143_v9 }
 0x134   : > { %5998 = vst [vmem:[#allocation28_spill] sm:$0xff] %v5079_v18  ;;  %v966_v58 = vadd.f32 %v4876_v4, %v793_v63  ;;  %1991 = vmatprep.subr.bf16.mxu0 %v4190_v61  ;;  %v1325_v6 = vadd.f32 %v4962_v29, %v1260_v17  ;;  %v1073_v32 = vadd.f32 %v4868_v0, %v794_v39  ;;  %v4199_v17 = vld [vmem:[%s5945_s5 + $0x1b8] ss:$12 sps:$4 sm:$0xff]  }
 0x135   : > { %v3162_v3 = vmul.f32 %v4944_v16, %v712_v11  ;;  %v795_v4 = vmul.f32 %v4918_v48, %v712_v11  ;;  %3807 = vmatpush3.bf16.msra.mxu1 %v4855_v36  ;;  %v796_v45 = vmul.f32 %v4921_v49, %v712_v11  ;;  %v797_v63 = vmul.f32 %v4924_v50, %v712_v11 }
 0x136   : > { %v1324_v61 = vadd.f32 %v4972_v51, %v1259_v57  ;;  %v1323_v41 = vadd.f32 %v4959_v23, %v1258_v60  ;;  %3808 = vmatprep.subr.bf16.mxu1 %v4198_v37  ;;  %v1373_v0 = vmax.f32 %v1325_v6, 0.0  ;;  %v5107_v36 = vmul.f32 %v4956_v14, %v5085_v21  ;;  %v4191_v57 = vld [vmem:[%s5945_s5 + $0x1b0] ss:$12 sps:$4 sm:$0xff]  }
 0x137   : > { %v5102_v39 = vadd.f32 %v3183_v42, %v3162_v3  ;;  %v968_v18 = vadd.f32 %v4878_v19, %v795_v4  ;;  %1992 = vmatpush1.bf16.msra.mxu0 %v4188_v53  ;;  %v970_v60 = vadd.f32 %v4882_v24, %v796_v45  ;;  %v1217_v11 = vmul.f32 %v4950_v25, %v1143_v9  ;;  %v4196_v19 = vld [vmem:[%s5945_s5 + $0x1cc] ss:$12 sps:$4 sm:$0xff]  }
 0x138   : > { %v1076_v56 = vadd.f32 %v4872_v2, %v797_v63  ;;  %v1372_v6 = vmax.f32 %v1324_v61, 0.0  ;;  %1993 = vmatprep.subr.bf16.mxu0 %v4193_v46  ;;  %v5118_v42 = vpack.c.bf16 %v1373_v0, %v1370_v22  ;;  %v1139_v53 = vpop.permute.xlu1 %1138  ;;  %v1371_v4 = vmax.f32 %v1323_v41, 0.0  ;;  %v4200_v41 = vld [vmem:[%s5945_s5 + $0x1d0] ss:$12 sps:$4 sm:$0xff]  }
 0x139   : > { %5999 = vst [vmem:[#allocation29_spill] sm:$0xff] %v5102_v39  ;;  %v1264_v3 = vadd.f32 %v1216_v35, %v968_v18  ;;  %v3184_v39 = vmul.f32 %v4967_v34, %v5085_v21  ;;  %3809 = vmatpush3.bf16.msra.mxu1 %v4198_v37  ;;  %v1265_v24 = vadd.f32 %v1217_v11, %v970_v60 }
 0x13a   : > { %6000 = vst [vmem:[#allocation30_spill] sm:$0xff] %v5118_v42  ;;  %v1266_v45 = vadd.f32 %v1218_v13, %v1076_v56  ;;  %v1213_v9 = vmul.f32 %v4936_v54, %v1139_v53  ;;  %v1214_v2 = vmul.f32 %v4950_v25, %v1139_v53  ;;  %3810 = vmatprep.subr.bf16.mxu1 %v4199_v17  ;;  %v4194_v13 = vld [vmem:[%s5945_s5 + $0x1c8] ss:$12 sps:$4 sm:$0xff]  }
 0x13b   : > { %v1329_v46 = vadd.f32 %v4959_v23, %v1264_v3  ;;  %v1215_v63 = vmul.f32 %v4956_v14, %v1139_v53  ;;  %v3182_v22 = vmul.f32 %v4967_v34, %v1139_v53  ;;  %v1414_v18 = vpack.c.bf16 %v1372_v6, %v1369_v59  ;;  %1994 = vmatpush1.bf16.msra.mxu0 %v4191_v57 }
 0x13c   : > { %v1330_v35 = vadd.f32 %v4972_v51, %v1265_v24  ;;  %v5129_v61 = vadd.f32 %v4962_v29, %v1266_v45  ;;  %v1261_v37 = vadd.f32 %v1213_v9, %v964_v26  ;;  %v1262_v56 = vadd.f32 %v1214_v2, %v966_v58  ;;  %1995 = vmatprep.subr.bf16.mxu0 %v4196_v19 }
 0x13d   : > { %v1263_v0 = vadd.f32 %v1215_v63, %v1073_v32  ;;  %v5138_v59 = vadd.f32 %v3182_v22, %v5061_v5  ;;  %1918 = vmatprep.mubr.bf16.mxu0 %v1414_v18  ;;  %2142 = vmatprep.mubr.bf16.mxu1 %v1414_v18  ;;  %v6001_v57 = vmax.f32 %v5037_v20, 0.0  ;;  %v1377_v58 = vmax.f32 %v1329_v46, 0.0  ;;  %v717_v11 = vpop.permute.xlu1 %716 }
 0x13e   : > { %v1219_v6 = vmul.f32 %v4936_v54, %v5085_v21  ;;  %v1327_v19 = vadd.f32 %v4972_v51, %v1262_v56  ;;  %3811 = vmatpush3.bf16.msra.mxu1 %v4199_v17  ;;  %v1378_v3 = vmax.f32 %v1330_v35, 0.0  ;;  %v800_v20 = vmul.f32 %v4924_v50, %v717_v11 }
 0x13f   : > { %v1413_v60 = vpack.c.bf16 %v1371_v4, %v6001_v57  ;;  %v5148_v5 = vadd.f32 %v4962_v29, %v1263_v0  ;;  %v3163_v53 = vmul.f32 %v4944_v16, %v717_v11  ;;  %v727_v4 = vpop.permute.xlu0 %726  ;;  %v798_v24 = vmul.f32 %v4918_v48, %v717_v11  ;;  %1996 = vmatpush1.bf16.msra.mxu0 %v4194_v13 }
 0x140   : > { %v799_v45 = vmul.f32 %v4921_v49, %v717_v11  ;;  %v1375_v9 = vmax.f32 %v1327_v19, 0.0  ;;  %v1326_v17 = vadd.f32 %v4959_v23, %v1261_v37  ;;  %3812 = vmatprep.subr.bf16.mxu1 %v4200_v41  ;;  %v1081_v2 = vadd.f32 %v4864_v62, %v800_v20 }
 0x141   : > { %1919 = vmatmul.mubr.bf16.gmra.mrb[36].mxu0 %v1413_v60  ;;  %2143 = vmatmul.mubr.bf16.gmra.mrb[20].mxu1 %v1413_v60  ;;  %v5156_v46 = vadd.f32 %v3184_v39, %v3163_v53  ;;  %v1220_v63 = vmul.f32 %v4950_v25, %v5085_v21  ;;  %v5161_v22 = vmul.f32 %v4944_v16, %v727_v4  ;;  %v6002_v18 = vmov 0   ;;  %v722_v0 = vpop.permute.xlu1 %721 }
 0x142   : > { %3030 = vmatprep.subr.bf16.mxu0 %v6002_v18  ;;  %v974_v35 = vadd.f32 %v4890_v38, %v798_v24  ;;  %v976_v56 = vadd.f32 %v4892_v7, %v799_v45  ;;  %v1417_v37 = vpack.c.bf16 %v1378_v3, %v1375_v9  ;;  %v1374_v13 = vmax.f32 %v1326_v17, 0.0  ;;  %3813 = vmatpush3.bf16.msra.mxu1 %v4200_v41 }
 0x143   : > { %v1269_v62 = vadd.f32 %v5107_v36, %v1081_v2  ;;  %v803_v39 = vmul.f32 %v4924_v50, %v722_v0  ;;  %v801_v57 = vmul.f32 %v4918_v48, %v722_v0  ;;  %v804_v21 = vmul.f32 %v4918_v48, %v727_v4  ;;  %v1159_v20 = vpop.permute.xlu0 %1158 }
 0x144   : > { %v1267_v11 = vadd.f32 %v1219_v6, %v974_v35  ;;  %v1268_v19 = vadd.f32 %v1220_v63, %v976_v56  ;;  %v802_v38 = vmul.f32 %v4921_v49, %v722_v0  ;;  %1928 = vmatprep.mubr.bf16.mxu0 %v1417_v37  ;;  %2150 = vmatprep.mubr.bf16.mxu1 %v1417_v37 }
 0x145   : > { %v5173_v7 = vadd.f32 %v4962_v29, %v1269_v62  ;;  %v1084_v41 = vadd.f32 %v4870_v1, %v803_v39  ;;  %v3164_v36 = vmul.f32 %v4944_v16, %v722_v0  ;;  %v1416_v3 = vpack.c.bf16 %v1377_v58, %v1374_v13 }
 0x146   : > { %v1332_v53 = vadd.f32 %v4959_v23, %v1267_v11  ;;  %v1333_v24 = vadd.f32 %v4972_v51, %v1268_v19  ;;  %v978_v6 = vadd.f32 %v4894_v10, %v801_v57  ;;  %v980_v45 = vadd.f32 %v4898_v40, %v802_v38  ;;  %v1151_v9 = vpop.permute.xlu1 %1150 }
 0x147   : > { %v984_v17 = vadd.f32 %v4915_v47, %v804_v21  ;;  %v805_v2 = vmul.f32 %v4921_v49, %v727_v4  ;;  %v806_v1 = vmul.f32 %v4924_v50, %v727_v4  ;;  %v1222_v35 = vmul.f32 %v4936_v54, %v1151_v9  ;;  %v1163_v13 = vpop.permute.xlu0 %1162 }
 0x148   : > { %v1380_v63 = vmax.f32 %v1332_v53, 0.0  ;;  %v1223_v56 = vmul.f32 %v4950_v25, %v1151_v9  ;;  %v3187_v10 = vmul.f32 %v4967_v34, %v1159_v20  ;;  %v1381_v0 = vmax.f32 %v1333_v24, 0.0 }
 0x149   : > { %1929 = vmatmul.mubr.bf16.gmra.mrb[40].mxu0 %v1416_v3  ;;  %2151 = vmatmul.mubr.bf16.gmra.mrb[24].mxu1 %v1416_v3  ;;  %v1224_v40 = vmul.f32 %v4956_v14, %v1151_v9  ;;  %v3185_v37 = vmul.f32 %v4967_v34, %v1151_v9  ;;  %v1089_v47 = vadd.f32 %v4884_v28, %v806_v1 }
 0x14a   : > { %v1270_v62 = vadd.f32 %v1222_v35, %v978_v6  ;;  %v1271_v39 = vadd.f32 %v1223_v56, %v980_v45  ;;  %v986_v4 = vadd.f32 %v4929_v52, %v805_v2  ;;  %v1228_v57 = vmul.f32 %v4936_v54, %v1159_v20 }
 0x14b   : > { %v1272_v21 = vadd.f32 %v1224_v40, %v1084_v41  ;;  %v5193_v11 = vadd.f32 %v3185_v37, %v3164_v36  ;;  %v1229_v19 = vmul.f32 %v4950_v25, %v1159_v20  ;;  %v1230_v38 = vmul.f32 %v4956_v14, %v1159_v20  ;;  %v732_v3 = vpop.permute.xlu1 %731  ;;  %v6003_v40 = vld [vmem:[#allocation19_spill] sm:$0xff] }
 0x14c   : > { %v1336_v53 = vadd.f32 %v4972_v51, %v1271_v39  ;;  %v1335_v24 = vadd.f32 %v4959_v23, %v1270_v62  ;;  %v5200_v28 = vmul.f32 %v4956_v14, %v1163_v13  ;;  %v3188_v6 = vmul.f32 %v4967_v34, %v1163_v13  ;;  %v747_v39 = vpop.permute.xlu0 %746 }
 0x14d   : > { %v5204_v52 = vadd.f32 %v4962_v29, %v1272_v21  ;;  %v3166_v41 = vmul.f32 %v4944_v16, %v732_v3  ;;  %v807_v36 = vmul.f32 %v4918_v48, %v732_v3  ;;  %v808_v45 = vmul.f32 %v4921_v49, %v732_v3  ;;  %v6004_v21 = vld [vmem:[#allocation11_spill] sm:$0xff] }
 0x14e   : > { %v809_v20 = vmul.f32 %v4924_v50, %v732_v3  ;;  %v1384_v9 = vmax.f32 %v1336_v53, 0.0  ;;  %v1383_v2 = vmax.f32 %v1335_v24, 0.0  ;;  %v1231_v1 = vmul.f32 %v4936_v54, %v1163_v13 }
 0x14f   : > { %v5211_v35 = vadd.f32 %v3187_v10, %v3166_v41  ;;  %v988_v56 = vadd.f32 %v4931_v15, %v807_v36  ;;  %v990_v37 = vadd.f32 %v6003_v40, %v808_v45  ;;  %v1232_v62 = vmul.f32 %v4950_v25, %v1163_v13 }
 0x150   : > { %v1092_v60 = vadd.f32 %v6004_v21, %v809_v20  ;;  %v1420_v58 = vpack.c.bf16 %v1384_v9, %v1381_v0  ;;  %v1419_v32 = vpack.c.bf16 %v1383_v2, %v1380_v63  ;;  %v5218_v26 = vmul.f32 %v4944_v16, %v747_v39  ;;  %v1155_v24 = vpop.permute.xlu1 %1154 }
 0x151   : > { %v1276_v3 = vadd.f32 %v1228_v57, %v988_v56  ;;  %v1277_v53 = vadd.f32 %v1229_v19, %v990_v37  ;;  %v816_v10 = vmul.f32 %v4918_v48, %v747_v39  ;;  %v818_v41 = vmul.f32 %v4924_v50, %v747_v39 }
 0x152   : > { %v1278_v15 = vadd.f32 %v1230_v38, %v1092_v60  ;;  %v1225_v36 = vmul.f32 %v4936_v54, %v1155_v24  ;;  %v1226_v13 = vmul.f32 %v4950_v25, %v1155_v24  ;;  %v1227_v45 = vmul.f32 %v4956_v14, %v1155_v24  ;;  %1938 = vmatprep.mubr.bf16.mxu0 %v1420_v58 }
 0x153   : > { %v1341_v63 = vadd.f32 %v4959_v23, %v1276_v3  ;;  %v1342_v0 = vadd.f32 %v4972_v51, %v1277_v53  ;;  %v3186_v57 = vmul.f32 %v4967_v34, %v1155_v24  ;;  %2158 = vmatprep.mubr.bf16.mxu1 %v1420_v58  ;;  %1939 = vmatmul.mubr.bf16.gmra.mrb[44].mxu0 %v1419_v32 }
 0x154   : > { %v5230_v20 = vadd.f32 %v4962_v29, %v1278_v15  ;;  %v1273_v60 = vadd.f32 %v1225_v36, %v984_v17  ;;  %v1274_v38 = vadd.f32 %v1226_v13, %v986_v4  ;;  %v1275_v9 = vadd.f32 %v1227_v45, %v1089_v47  ;;  %2159 = vmatmul.mubr.bf16.gmra.mrb[28].mxu1 %v1419_v32  ;;  %v6005_v13 = vld [vmem:[#allocation13_spill] sm:$0xff] }
 0x155   : > { %v1389_v2 = vmax.f32 %v1341_v63, 0.0  ;;  %v5233_v56 = vadd.f32 %v3186_v57, %v5161_v22  ;;  %v817_v40 = vmul.f32 %v4921_v49, %v747_v39  ;;  %v1390_v21 = vmax.f32 %v1342_v0, 0.0  ;;  %v737_v3 = vpop.permute.xlu1 %736  ;;  %v1175_v39 = vpop.permute.xlu0 %1174  ;;  %v6006_v63 = vld [vmem:[#allocation9_spill] sm:$0xff] }
 0x156   : > { %v5238_v58 = vadd.f32 %v4962_v29, %v1275_v9  ;;  %v1339_v53 = vadd.f32 %v4972_v51, %v1274_v38  ;;  %v1338_v17 = vadd.f32 %v4959_v23, %v1273_v60  ;;  %v812_v47 = vmul.f32 %v4924_v50, %v737_v3  ;;  %v6007_v60 = vld [vmem:[#allocation20_spill] sm:$0xff]  ;;  %v6008_v9 = vld [vmem:[#allocation21_spill] sm:$0xff] }
 0x157   : > { %v3167_v32 = vmul.f32 %v4944_v16, %v737_v3  ;;  %v810_v22 = vmul.f32 %v4918_v48, %v737_v3  ;;  %v811_v4 = vmul.f32 %v4921_v49, %v737_v3  ;;  %v5247_v36 = vadd.f32 %v5013_v27, %v816_v10 }
 0x158   : > { %v1387_v24 = vmax.f32 %v1339_v53, 0.0  ;;  %v1386_v15 = vmax.f32 %v1338_v17, 0.0  ;;  %v5250_v45 = vadd.f32 %v6005_v13, %v818_v41  ;;  %v1097_v0 = vadd.f32 %v6006_v63, %v812_v47 }
 0x159   : > { %v5253_v57 = vadd.f32 %v3188_v6, %v3167_v32  ;;  %v994_v38 = vadd.f32 %v6007_v60, %v810_v22  ;;  %v996_v37 = vadd.f32 %v6008_v9, %v811_v4  ;;  %v742_v19 = vpop.permute.xlu1 %741  ;;  %v5258_v53 = vadd.f32 %v5019_v33, %v817_v40  ;;  %v5274_v4 = vpop.permute.xlu0 %1178 }
 0x15a   : > { %v1423_v42 = vpack.c.bf16 %v1390_v21, %v1387_v24  ;;  %v1422_v3 = vpack.c.bf16 %v1389_v2, %v1386_v15  ;;  %v3191_v27 = vmul.f32 %v4967_v34, %v1175_v39  ;;  %v1281_v10 = vadd.f32 %v5200_v28, %v1097_v0 }
 0x15b   : > { %v1279_v41 = vadd.f32 %v1231_v1, %v994_v38  ;;  %v1280_v17 = vadd.f32 %v1232_v62, %v996_v37  ;;  %v815_v47 = vmul.f32 %v4924_v50, %v742_v19  ;;  %v1391_v6 = vmax.f32 %v5230_v20, 0.0  ;;  %v6009_v1 = vld [vmem:[#allocation10_spill] sm:$0xff]  ;;  %v5286_v38 = vld [vmem:[%s5954_s14] ss:$0 sm:$0xff] }
 0x15c   : > { %v813_v32 = vmul.f32 %v4918_v48, %v742_v19  ;;  %v814_v22 = vmul.f32 %v4921_v49, %v742_v19  ;;  %1948 = vmatprep.mubr.bf16.mxu0 %v1423_v42  ;;  %2166 = vmatprep.mubr.bf16.mxu1 %v1423_v42  ;;  %v1240_v2 = vmul.f32 %v4936_v54, %v1175_v39  ;;  %v1388_v42 = vmax.f32 %v5238_v58, 0.0 }
 0x15d   : > { %v1346_v33 = vadd.f32 %v4962_v29, %v1281_v10  ;;  %v1344_v40 = vadd.f32 %v4959_v23, %v1279_v41  ;;  %v1345_v28 = vadd.f32 %v4972_v51, %v1280_v17  ;;  %v1100_v62 = vadd.f32 %v6009_v1, %v815_v47  ;;  %1949 = vmatmul.mubr.bf16.gmra.mrb[48].mxu0 %v1422_v3 }
 0x15e   : > { %v3168_v37 = vmul.f32 %v4944_v16, %v742_v19  ;;  %v998_v20 = vadd.f32 %v4990_v55, %v813_v32  ;;  %v1000_v21 = vadd.f32 %v4994_v31, %v814_v22  ;;  %2167 = vmatmul.mubr.bf16.gmra.mrb[32].mxu1 %v1422_v3  ;;  %v1167_v13 = vpop.permute.xlu1 %1166  ;;  %v1241_v63 = vmul.f32 %v4950_v25, %v1175_v39 }
 0x15f   : > { %v1392_v24 = vmax.f32 %v1344_v40, 0.0  ;;  %v1393_v15 = vmax.f32 %v1345_v28, 0.0  ;;  %v1242_v0 = vmul.f32 %v4956_v14, %v1175_v39  ;;  %v1234_v60 = vmul.f32 %v4936_v54, %v1167_v13 }
 0x160   : > { %v1235_v19 = vmul.f32 %v4950_v25, %v1167_v13  ;;  %v1236_v55 = vmul.f32 %v4956_v14, %v1167_v13  ;;  %v3189_v31 = vmul.f32 %v4967_v34, %v1167_v13  ;;  %v5290_v58 = vmul.f32 %v4956_v14, %v5274_v4 }
 0x161   : > { %v5294_v39 = vmul.f32 %v4967_v34, %v5274_v4  ;;  %v6010_v9 = vmax.f32 %v5000_v8, 0.0  ;;  %v6011_v3 = vmax.f32 %v5006_v12, 0.0  ;;  %v6012_v41 = vmax.f32 %v5148_v5, 0.0 }
 0x162   : > { %v6013_v17 = vmax.f32 %v5129_v61, 0.0  ;;  %v1282_v32 = vadd.f32 %v1234_v60, %v998_v20  ;;  %v1283_v22 = vadd.f32 %v1235_v19, %v1000_v21  ;;  %v1284_v40 = vadd.f32 %v1236_v55, %v1100_v62  ;;  %v6019_v60 = vld [vmem:[#allocation22_spill] sm:$0xff] }
 0x163   : > { %v5300_v10 = vpack.c.bf16 %v6011_v3, %v6010_v9  ;;  %v5308_v28 = vadd.f32 %v3189_v31, %v3168_v37  ;;  %v5312_v1 = vmul.f32 %v4936_v54, %v5274_v4  ;;  %v6015_v8 = vmax.f32 %v5173_v7, 0.0  ;;  %v752_v62 = vpop.permute.xlu1 %751 }
 0x164   : > { %v5306_v47 = vpack.c.bf16 %v6013_v17, %v6012_v41  ;;  %v6016_v12 = vmax.f32 %v5204_v52, 0.0  ;;  %v5320_v5 = vpack.c.bf16 %v1391_v6, %v1388_v42  ;;  %v3217_v61 = vadd.f32 %v5286_v38, %v4992_v44  ;;  %v6020_v17 = vld [vmem:[#allocation24_spill] sm:$0xff] }
 0x165   : > { %v1349_v20 = vadd.f32 %v4962_v29, %v1284_v40  ;;  %v1348_v37 = vadd.f32 %v4972_v51, %v1283_v22  ;;  %v1347_v21 = vadd.f32 %v4959_v23, %v1282_v32  ;;  %v3218_v19 = vadd.f32 %v5286_v38, %v6019_v60  ;;  %v6021_v22 = vld [vmem:[#allocation18_spill] sm:$0xff] }
 0x166   : > { %6014 = vst [vmem:[#allocation19_spill] sm:$0xff] %v5306_v47  ;;  %v5318_v13 = vpack.c.bf16 %v6016_v12, %v6015_v8  ;;  %6018 = vst [vmem:[#allocation13_spill] sm:$0xff] %v5320_v5  ;;  %v3170_v7 = vmul.f32 %v4944_v16, %v752_v62  ;;  %v819_v52 = vmul.f32 %v4918_v48, %v752_v62  ;;  %v1394_v31 = vmax.f32 %v1346_v33, 0.0 }
 0x167   : > { %v820_v6 = vmul.f32 %v4921_v49, %v752_v62  ;;  %v821_v42 = vmul.f32 %v4924_v50, %v752_v62  ;;  %v1396_v55 = vmax.f32 %v1348_v37, 0.0  ;;  %v1395_v44 = vmax.f32 %v1347_v21, 0.0 }
 0x168   : > { %6017 = vst [vmem:[#allocation11_spill] sm:$0xff] %v5318_v13  ;;  %v1397_v9 = vmax.f32 %v1349_v20, 0.0  ;;  %v5333_v3 = vadd.f32 %v3191_v27, %v3170_v7  ;;  %v1008_v41 = vadd.f32 %v5027_v43, %v819_v52  ;;  %v3233_v5 = vmax.f32 %v3217_v61, 0.0  ;;  %v1171_v37 = vpop.permute.xlu1 %1170 }
 0x169   : > { %v1010_v32 = vadd.f32 %v6020_v17, %v820_v6  ;;  %v1108_v40 = vadd.f32 %v6021_v22, %v821_v42  ;;  %v1426_v8 = vpack.c.bf16 %v1396_v55, %v1393_v15  ;;  %v1425_v12 = vpack.c.bf16 %v1395_v44, %v1392_v24 }
 0x16a   : > { %v5338_v60 = vpack.c.bf16 %v1397_v9, %v1394_v31  ;;  %v1288_v13 = vadd.f32 %v1240_v2, %v1008_v41  ;;  %v3234_v21 = vmax.f32 %v3218_v19, 0.0  ;;  %v1237_v33 = vmul.f32 %v4936_v54, %v1171_v37 }
 0x16b   : > { %v1289_v47 = vadd.f32 %v1241_v63, %v1010_v32  ;;  %v1290_v62 = vadd.f32 %v1242_v0, %v1108_v40  ;;  %v1238_v27 = vmul.f32 %v4950_v25, %v1171_v37  ;;  %v1239_v43 = vmul.f32 %v4956_v14, %v1171_v37  ;;  %1958 = vmatprep.mubr.bf16.mxu0 %v1426_v8  ;;  %v6023_v32 = vld [vmem:[#allocation12_spill] sm:$0xff] }
 0x16c   : > { %v3190_v20 = vmul.f32 %v4967_v34, %v1171_v37  ;;  %v1353_v15 = vadd.f32 %v4959_v23, %v1288_v13  ;;  %2174 = vmatprep.mubr.bf16.mxu1 %v1426_v8  ;;  %1959 = vmatmul.mubr.bf16.gmra.mrb[52].mxu0 %v1425_v12  ;;  %v1285_v2 = vadd.f32 %v1237_v33, %v5247_v36  ;;  %v6024_v8 = vld [vmem:[#allocation25_spill] sm:$0xff] }
 0x16d   : > { %v1354_v24 = vadd.f32 %v4972_v51, %v1289_v47  ;;  %v1355_v61 = vadd.f32 %v4962_v29, %v1290_v62  ;;  %v1286_v63 = vadd.f32 %v1238_v27, %v5258_v53  ;;  %v1287_v0 = vadd.f32 %v1239_v43, %v5250_v45  ;;  %2175 = vmatmul.mubr.bf16.gmra.mrb[36].mxu1 %v1425_v12  ;;  %v6022_v47 = vld [vmem:[#allocation23_spill] sm:$0xff]  ;;  %v757_v36 = vpop.permute.xlu1 %756  ;;  %v6025_v62 = vld [vmem:[#allocation26_spill] sm:$0xff] }
 0x16e   : > { %v5351_v19 = vadd.f32 %v3190_v20, %v5218_v26  ;;  %v1401_v7 = vmax.f32 %v1353_v15, 0.0  ;;  %v1244_v13 = vmul.f32 %v4950_v25, %v5274_v4  ;;  %v5355_v52 = vpack.c.bf16 %v3234_v21, %v3233_v5 }
 0x16f   : > { %v3219_v6 = vadd.f32 %v5286_v38, %v6022_v47  ;;  %v1352_v42 = vadd.f32 %v4962_v29, %v1287_v0  ;;  %v1351_v53 = vadd.f32 %v4972_v51, %v1286_v63  ;;  %v1350_v45 = vadd.f32 %v4959_v23, %v1285_v2 }
 0x170   : > { %v3220_v26 = vadd.f32 %v5286_v38, %v5072_v30  ;;  %v1402_v55 = vmax.f32 %v1354_v24, 0.0  ;;  %v824_v44 = vmul.f32 %v4924_v50, %v757_v36  ;;  %v822_v4 = vmul.f32 %v4918_v48, %v757_v36 }
 0x171   : > { %v823_v5 = vmul.f32 %v4921_v49, %v757_v36  ;;  %v1403_v31 = vmax.f32 %v1355_v61, 0.0  ;;  %v1399_v9 = vmax.f32 %v1351_v53, 0.0  ;;  %v1398_v41 = vmax.f32 %v1350_v45, 0.0  ;;  %v762_v30 = vpop.permute.xlu1 %761  ;;  %v6028_v45 = vld [vmem:[#allocation28_spill] sm:$0xff] }
 0x172   : > { %v1400_v17 = vmax.f32 %v1352_v42, 0.0  ;;  %v1113_v22 = vadd.f32 %v6023_v32, %v824_v44  ;;  %v3171_v40 = vmul.f32 %v4944_v16, %v757_v36  ;;  %v1014_v12 = vadd.f32 %v6024_v8, %v822_v4  ;;  %v6026_v36 = vld [vmem:[#allocation14_spill] sm:$0xff]  ;;  %v6029_v44 = vld [vmem:[#allocation29_spill] sm:$0xff] }
 0x173   : > { %v1016_v37 = vadd.f32 %v6025_v62, %v823_v5  ;;  %v1429_v21 = vpack.c.bf16 %v1402_v55, %v1399_v9  ;;  %v1428_v33 = vpack.c.bf16 %v1401_v7, %v1398_v41  ;;  %v3236_v43 = vmax.f32 %v3220_v26, 0.0 }
 0x174   : > { %v5371_v27 = vpack.c.bf16 %v1403_v31, %v1400_v17  ;;  %v1293_v20 = vadd.f32 %v5290_v58, %v1113_v22  ;;  %v1291_v15 = vadd.f32 %v5312_v1, %v1014_v12  ;;  %v827_v61 = vmul.f32 %v4924_v50, %v762_v30 }
 0x175   : > { %v1292_v24 = vadd.f32 %v1244_v13, %v1016_v37  ;;  %v825_v2 = vmul.f32 %v4918_v48, %v762_v30  ;;  %v826_v63 = vmul.f32 %v4921_v49, %v762_v30  ;;  %1968 = vmatprep.mubr.bf16.mxu0 %v1429_v21  ;;  %2182 = vmatprep.mubr.bf16.mxu1 %v1429_v21  ;;  %v3235_v0 = vmax.f32 %v3219_v6, 0.0  ;;  %v6027_v6 = vld [vmem:[#allocation27_spill] sm:$0xff] }
 0x176   : > { %v1358_v47 = vadd.f32 %v4962_v29, %v1293_v20  ;;  %v1356_v7 = vadd.f32 %v4959_v23, %v1291_v15  ;;  %v1116_v58 = vadd.f32 %v6026_v36, %v827_v61  ;;  %1969 = vmatmul.mubr.bf16.gmra.mrb[56].mxu0 %v1428_v33  ;;  %v3208_v1 = vadd.f32 %v5294_v39, %v3171_v40  ;;  %v1183_v55 = vpop.permute.xlu1 %1182 }
 0x177   : > { %v1357_v42 = vadd.f32 %v4972_v51, %v1292_v24  ;;  %v3172_v50 = vmul.f32 %v4944_v16, %v762_v30  ;;  %2183 = vmatmul.mubr.bf16.gmra.mrb[40].mxu1 %v1428_v33  ;;  %v5384_v48 = vpack.c.bf16 %v3236_v43, %v3235_v0  ;;  %v3221_v49 = vadd.f32 %v5286_v38, %v5138_v59 }
 0x178   : > { %v1404_v13 = vmax.f32 %v1356_v7, 0.0  ;;  %v1018_v53 = vadd.f32 %v6027_v6, %v825_v2  ;;  %v1020_v26 = vadd.f32 %v6028_v45, %v826_v63  ;;  %v3222_v4 = vadd.f32 %v5286_v38, %v6029_v44  ;;  %v4203_v6 = vld [vmem:[%s5947_s7 + $0x4] ss:$8 sps:$4 sm:$0xff]   ;;  %v4204_v45 = vld [vmem:[%s5947_s7 + $0x10] ss:$8 sps:$4 sm:$0xff]  }
 0x179   : > { %v1246_v5 = vmul.f32 %v4936_v54, %v1183_v55  ;;  %v1247_v39 = vmul.f32 %v4950_v25, %v1183_v55  ;;  %v1248_v16 = vmul.f32 %v4956_v14, %v1183_v55  ;;  %v3193_v31 = vmul.f32 %v4967_v34, %v1183_v55  ;;  %2644 = vmatprep.subr.bf16.mxu1 %v4203_v6  ;;  %v4209_v55 = vld [vmem:[%s5947_s7 + $0x24] ss:$8 sps:$4 sm:$0xff]   ;;  %v4212_v44 = vld [vmem:[%s5947_s7 + $0x34] ss:$8 sps:$4 sm:$0xff]  }
 0x17a   : > { %v1405_v9 = vmax.f32 %v1357_v42, 0.0  ;;  %v3237_v41 = vmax.f32 %v3221_v49, 0.0  ;;  %v3238_v59 = vmax.f32 %v3222_v4, 0.0  ;;  %v3223_v17 = vadd.f32 %v5286_v38, %v5156_v46  ;;  %v6032_v49 = vld [vmem:[#allocation11_spill] sm:$0xff]  ;;  %v4215_v4 = vld [vmem:[%s5947_s7 + $0x44] ss:$8 sps:$4 sm:$0xff]  }
 0x17b   : > { %v1294_v32 = vadd.f32 %v1246_v5, %v1018_v53  ;;  %v1295_v22 = vadd.f32 %v1247_v39, %v1020_v26  ;;  %v1296_v40 = vadd.f32 %v1248_v16, %v1116_v58  ;;  %v1406_v8 = vmax.f32 %v1358_v47, 0.0  ;;  %v4206_v53 = vld [vmem:[%s5947_s7 + $0x14] ss:$8 sps:$4 sm:$0xff]   ;;  %v4207_v26 = vld [vmem:[%s5947_s7 + $0x20] ss:$8 sps:$4 sm:$0xff]  }
 0x17c   : > { %v3209_v12 = vadd.f32 %v3193_v31, %v3172_v50  ;;  %v5398_v62 = vpack.c.bf16 %v3238_v59, %v3237_v41  ;;  %v3224_v54 = vadd.f32 %v5286_v38, %v5193_v11  ;;  %v3225_v25 = vadd.f32 %v5286_v38, %v5233_v56  ;;  %v4213_v5 = vld [vmem:[%s5947_s7 + $0x40] ss:$8 sps:$4 sm:$0xff]   ;;  %v4218_v39 = vld [vmem:[%s5947_s7 + $0x54] ss:$8 sps:$4 sm:$0xff]   ;;  %v4216_v16 = vld [vmem:[%s5947_s7 + $0x50] ss:$8 sps:$4 sm:$0xff]  }
 0x17d   : > { %v1361_v14 = vadd.f32 %v4962_v29, %v1296_v40  ;;  %v1360_v34 = vadd.f32 %v4972_v51, %v1295_v22  ;;  %v1359_v37 = vadd.f32 %v4959_v23, %v1294_v32  ;;  %v3226_v46 = vadd.f32 %v5286_v38, %v5211_v35  ;;  %v4221_v31 = vld [vmem:[%s5947_s7 + $0x64] ss:$8 sps:$4 sm:$0xff]   ;;  %v4222_v41 = vld [vmem:[%s5947_s7 + $0x70] ss:$8 sps:$4 sm:$0xff]   ;;  %v4225_v59 = vld [vmem:[%s5947_s7 + $0x80] ss:$8 sps:$4 sm:$0xff]  }
 0x17e   : > { %v3239_v30 = vmax.f32 %v3223_v17, 0.0  ;;  %v3240_v21 = vmax.f32 %v3224_v54, 0.0  ;;  %v3241_v33 = vmax.f32 %v3225_v25, 0.0  ;;  %v3227_v43 = vadd.f32 %v5286_v38, %v5253_v57  ;;  %v4227_v17 = vld [vmem:[%s5947_s7 + $0x84] ss:$8 sps:$4 sm:$0xff]  }
 0x17f   : > { %v1408_v20 = vmax.f32 %v1360_v34, 0.0  ;;  %v1407_v11 = vmax.f32 %v1359_v37, 0.0  ;;  %v1409_v15 = vmax.f32 %v1361_v14, 0.0  ;;  %v3242_v24 = vmax.f32 %v3226_v46, 0.0  ;;  %v4230_v32 = vld [vmem:[%s5947_s7 + $0x94] ss:$8 sps:$4 sm:$0xff]  }
 0x180   : > { %v5411_v56 = vpack.c.bf16 %v3240_v21, %v3239_v30  ;;  %v3228_v29 = vadd.f32 %v5286_v38, %v5308_v28  ;;  %v3229_v23 = vadd.f32 %v5286_v38, %v5351_v19  ;;  %v3243_v57 = vmax.f32 %v3227_v43, 0.0  ;;  %v4228_v22 = vld [vmem:[%s5947_s7 + $0x90] ss:$8 sps:$4 sm:$0xff]   ;;  %v4233_v40 = vld [vmem:[%s5947_s7 + $0xa4] ss:$8 sps:$4 sm:$0xff]  }
 0x181   : > { %v1432_v51 = vpack.c.bf16 %v1408_v20, %v1405_v9  ;;  %v1431_v35 = vpack.c.bf16 %v1407_v11, %v1404_v13  ;;  %v5417_v61 = vpack.c.bf16 %v1409_v15, %v1406_v8  ;;  %v5419_v2 = vpack.c.bf16 %v3242_v24, %v3241_v33  ;;  %v6033_v13 = vld [vmem:[#allocation13_spill] sm:$0xff]  ;;  %v4224_v9 = vld [vmem:[%s5947_s7 + $0x74] ss:$8 sps:$4 sm:$0xff]   ;;  %v4234_v54 = vld [vmem:[%s5947_s7 + $0xb0] ss:$8 sps:$4 sm:$0xff]  }
 0x182   : > { %v3244_v63 = vmax.f32 %v3228_v29, 0.0  ;;  %v3230_v0 = vadd.f32 %v5286_v38, %v5333_v3  ;;  %v3245_v47 = vmax.f32 %v3229_v23, 0.0  ;;  %v3231_v7 = vadd.f32 %v5286_v38, %v3208_v1  ;;  %v6031_v1 = vld [vmem:[#allocation19_spill] sm:$0xff]  ;;  %v4231_v8 = vld [vmem:[%s5947_s7 + $0xa0] ss:$8 sps:$4 sm:$0xff]  }
 0x183   : > { %1978 = vmatprep.mubr.bf16.mxu0 %v1432_v51  ;;  %2190 = vmatprep.mubr.bf16.mxu1 %v1432_v51  ;;  %v3232_v28 = vadd.f32 %v5286_v38, %v3209_v12  ;;  %v6030_v38 = vld [vmem:[#allocation30_spill] sm:$0xff]  ;;  %v4236_v12 = vld [vmem:[%s5947_s7 + $0xb4] ss:$8 sps:$4 sm:$0xff]   ;;  %v4237_v25 = vld [vmem:[%s5947_s7 + $0xc0] ss:$8 sps:$4 sm:$0xff]  }
 0x184   : > { %1979 = vmatmul.mubr.bf16.gmra.mrb[60].mxu0 %v1431_v35  ;;  %2191 = vmatmul.mubr.bf16.gmra.mrb[44].mxu1 %v1431_v35  ;;  %v5425_v19 = vpack.c.bf16 %v3244_v63, %v3243_v57  ;;  %v3246_v42 = vmax.f32 %v3230_v0, 0.0  ;;  %v3247_v36 = vmax.f32 %v3231_v7, 0.0  ;;  %v4239_v14 = vld [vmem:[%s5947_s7 + $0xc4] ss:$8 sps:$4 sm:$0xff]   ;;  %v4242_v34 = vld [vmem:[%s5947_s7 + $0xd4] ss:$8 sps:$4 sm:$0xff]  }
 0x185   : > { %3814 = vmatprep.mubr.msk.bf16.mxu1 %vm1851_vm1, %v5300_v10  ;;  %2021 = vmatprep.mubr.bf16.mxu0 %v6002_v18  ;;  %v3248_v58 = vmax.f32 %v3232_v28, 0.0  ;;  %v4240_v37 = vld [vmem:[%s5947_s7 + $0xd0] ss:$8 sps:$4 sm:$0xff]   ;;  %v4243_v46 = vld [vmem:[%s5947_s7 + $0xe0] ss:$8 sps:$4 sm:$0xff]  }
 0x186   : > { %v5430_v3 = vpack.c.bf16 %v3246_v42, %v3245_v47  ;;  %v4245_v30 = vld [vmem:[%s5947_s7 + $0xe4] ss:$8 sps:$4 sm:$0xff]   ;;  %v4248_v21 = vld [vmem:[%s5947_s7 + $0xf4] ss:$8 sps:$4 sm:$0xff]   ;;  %v4246_v33 = vld [vmem:[%s5947_s7 + $0xf0] ss:$8 sps:$4 sm:$0xff]  }
 0x187   : > { %v5432_v50 = vpack.c.bf16 %v3248_v58, %v3247_v36  ;;  %v4251_v43 = vld [vmem:[%s5947_s7 + $0x104] ss:$8 sps:$4 sm:$0xff]  }
 0x18c   : > { %3593 = vmatmul.mubr.msk.bf16.vlgmr.msra.gmra.mrb[32].mxu0 %vm1851_vm1, %v5300_v10  ;;  %3815 = vmatmul.mubr.msk.bf16.vlgmr.msra.gmra.mrb[48].mxu1 %vm1851_vm1, %v6030_v38  ;;  %v4201_v10 = vld [vmem:[%s5947_s7] ss:$8 sps:$4 sm:$0xff]  }
 0x18d   : > { %3818 = vmatprep.mubr.msk.bf16.mxu1 %vm1851_vm1, %v6031_v1  ;;  %2031 = vmatprep.mubr.bf16.mxu0 %v6002_v18 }
 0x18e   : > { %2645 = vmatpush1.bf16.msra.mxu1 %v4201_v10 }
 0x18f   : > { %2646 = vmatprep.subr.bf16.mxu1 %v4206_v53 }
 0x192   : > { %2647 = vmatpush1.bf16.msra.mxu1 %v4204_v45 }
 0x193   : > { %2648 = vmatprep.subr.bf16.mxu1 %v4209_v55 }
 0x194   : > { %3594 = vmatmul.mubr.msk.bf16.gmra.mrb[36].mxu0 %vm1851_vm1, %v6030_v38  ;;  %3819 = vmatmul.mubr.msk.bf16.gmra.mrb[52].mxu1 %vm1851_vm1, %v6032_v49 }
 0x195   : > { %3822 = vmatprep.mubr.msk.bf16.mxu1 %vm1851_vm1, %v6033_v13  ;;  %2041 = vmatprep.mubr.bf16.mxu0 %v6002_v18 }
 0x196   : > { %2649 = vmatpush1.bf16.msra.mxu1 %v4207_v26 }
 0x197   : > { %2650 = vmatprep.subr.bf16.mxu1 %v4212_v44 }
 0x19c   : > { %3595 = vmatmul.mubr.msk.bf16.gmra.mrb[40].mxu0 %vm1851_vm1, %v6031_v1  ;;  %3823 = vmatmul.mubr.msk.bf16.gmra.mrb[56].mxu1 %vm1851_vm1, %v5338_v60 }
 0x19d   : > { %3826 = vmatprep.mubr.msk.bf16.mxu1 %vm1851_vm1, %v5371_v27  ;;  %2051 = vmatprep.mubr.bf16.mxu0 %v6002_v18 }
 0x1a4   : > { %3596 = vmatmul.mubr.msk.bf16.gmra.mrb[44].mxu0 %vm1851_vm1, %v6032_v49  ;;  %3827 = vmatmul.mubr.msk.bf16.gmra.mrb[60].mxu1 %vm1851_vm1, %v5417_v61 }
 0x1a5   : > { %2061 = vmatprep.mubr.bf16.mxu0 %v6002_v18 }
 0x1ac   : > { %3597 = vmatmul.mubr.msk.bf16.gmra.mrb[48].mxu0 %vm1851_vm1, %v6033_v13 }
 0x1ad   : > { %2071 = vmatprep.mubr.bf16.mxu0 %v6002_v18 }
 0x1b4   : > { %3598 = vmatmul.mubr.msk.bf16.gmra.mrb[52].mxu0 %vm1851_vm1, %v5338_v60  ;;  %v4210_v60 = vld [vmem:[%s5947_s7 + $0x30] ss:$8 sps:$4 sm:$0xff]  }
 0x1b5   : > { %2081 = vmatprep.mubr.bf16.mxu0 %v6002_v18  ;;  %2651 = vmatpush1.bf16.msra.mxu1 %v4210_v60 }
 0x1b6   : > { %2652 = vmatprep.subr.bf16.mxu1 %v4215_v4 }
 0x1b9   : > { %2653 = vmatpush1.bf16.msra.mxu1 %v4213_v5 }
 0x1ba   : > { %2654 = vmatprep.subr.bf16.mxu1 %v4218_v39 }
 0x1bc   : > { %3599 = vmatmul.mubr.msk.bf16.gmra.mrb[56].mxu0 %vm1851_vm1, %v5371_v27  ;;  %v4219_v27 = vld [vmem:[%s5947_s7 + $0x60] ss:$8 sps:$4 sm:$0xff]  }
 0x1bd   : > { %2091 = vmatprep.mubr.bf16.mxu0 %v6002_v18  ;;  %2655 = vmatpush1.bf16.msra.mxu1 %v4216_v16 }
 0x1be   : > { %2656 = vmatprep.subr.bf16.mxu1 %v4221_v31 }
 0x1c1   : > { %2657 = vmatpush1.bf16.msra.mxu1 %v4219_v27 }
 0x1c2   : > { %2658 = vmatprep.subr.bf16.mxu1 %v4224_v9 }
 0x1c4   : > { %3600 = vmatmul.mubr.msk.bf16.gmra.mrb[60].mxu0 %vm1851_vm1, %v5417_v61 }
 0x1c5   : > { %2659 = vmatpush1.bf16.msra.mxu1 %v4222_v41 }
 0x1c6   : > { %2660 = vmatprep.subr.bf16.mxu1 %v4227_v17 }
 0x1c9   : > { %2661 = vmatpush1.bf16.msra.mxu1 %v4225_v59 }
 0x1ca   : > { %2662 = vmatprep.subr.bf16.mxu1 %v4230_v32 }
 0x1cd   : > { %2663 = vmatpush1.bf16.msra.mxu1 %v4228_v22 }
 0x1ce   : > { %2664 = vmatprep.subr.bf16.mxu1 %v4233_v40 }
 0x1d1   : > { %2665 = vmatpush1.bf16.msra.mxu1 %v4231_v8 }
 0x1d2   : > { %2666 = vmatprep.subr.bf16.mxu1 %v4236_v12  ;;  %v1514_v12 = vld [vmem:[%s5946_s6] sm:$0x7] }
 0x1d5   : > { %2667 = vmatpush1.bf16.msra.mxu1 %v4234_v54 }
 0x1d6   : > { %2668 = vmatprep.subr.bf16.mxu1 %v4239_v14 }
 0x1d9   : > { %2669 = vmatpush1.bf16.msra.mxu1 %v4237_v25 }
 0x1da   : > { %2670 = vmatprep.subr.bf16.mxu1 %v4242_v34 }
 0x1dd   : > { %2671 = vmatpush1.bf16.msra.mxu1 %v4240_v37  ;;  %v6034_v37 = vld [vmem:[#allocation17_spill] sm:$0xff] }
 0x1de   : > { %2672 = vmatprep.subr.bf16.mxu1 %v4245_v30  ;;  %v6035_v30 = vld [vmem:[#allocation15_spill] sm:$0xff] }
 0x1e1   : > { %2673 = vmatpush1.bf16.msra.mxu1 %v4243_v46  ;;  %v5598_v46 = vrot.slane %v1514_v12, %v6034_v37 }
 0x1e2   : > { %2674 = vmatprep.subr.bf16.mxu1 %v4248_v21  ;;  %v5601_v21 = vrot.slane %v1514_v12, %v6035_v30 }
 0x1e5   : > { %2675 = vmatpush1.bf16.msra.mxu1 %v4246_v33  ;;  %v6036_v33 = vld [vmem:[#allocation16_spill] sm:$0xff] }
 0x1e6   : > { %2757 = vmatprep.subr.bf16.mxu1 %v4251_v43  ;;  %v5604_v43 = vrot.slane %v1514_v12, %v6036_v33 }
 0x204   : > { %v3710_v20 = vpop.f32.mrb[16].mxu1 }
 0x205   : > { %v3711_v11 = vpop.f32.mrb[17].mxu1 }
 0x206   : > { %v3712_v15 = vadd.f32 %v3711_v11, %v3710_v20  ;;  %v3713_v24 = vpop.f32.mrb[18].mxu1 }
 0x207   : > { %v3714_v29 = vpop.f32.mrb[19].mxu1 }
 0x208   : > { %v3715_v23 = vadd.f32 %v3714_v29, %v3713_v24  ;;  %v2137_v29 = vadd.f32 %v3712_v15, %v5598_v46 }
 0x214   : > { %v3716_v51 = vpop.f32.mrb[20].mxu1 }
 0x215   : > { %v3717_v35 = vpop.f32.mrb[21].mxu1 }
 0x216   : > { %v3718_v61 = vadd.f32 %v3717_v35, %v3716_v51  ;;  %v3719_v57 = vpop.f32.mrb[22].mxu1 }
 0x217   : > { %v3720_v63 = vpop.f32.mrb[23].mxu1 }
 0x218   : > { %v3721_v0 = vadd.f32 %v3720_v63, %v3719_v57  ;;  %v2145_v20 = vadd.f32 %v3718_v61, %v5598_v46 }
 0x21c   : > { %v3722_v47 = vpop.f32.mrb[24].mxu1 }
 0x21d   : > { %v3723_v7 = vpop.f32.mrb[25].mxu1 }
 0x21e   : > { %v5570_v28 = vadd.f32 %v3723_v7, %v3722_v47  ;;  %v3725_v42 = vpop.f32.mrb[26].mxu1  ;;  %v2148_v47 = vadd.f32 %v3721_v0, %v5598_v46 }
 0x21f   : > { %v3726_v36 = vpop.f32.mrb[27].mxu1 }
 0x220   : > { %v5572_v58 = vadd.f32 %v3726_v36, %v3725_v42  ;;  %v2153_v37 = vadd.f32 %v5570_v28, %v5598_v46 }
 0x227   : > { %v3728_v38 = vpop.f32.mrb[28].mxu1 }
 0x228   : > { %v3729_v1 = vpop.f32.mrb[29].mxu1 }
 0x229   : > { %v5574_v49 = vadd.f32 %v3729_v1, %v3728_v38  ;;  %v3731_v13 = vpop.f32.mrb[30].mxu1  ;;  %v2140_v1 = vadd.f32 %v3715_v23, %v5598_v46 }
 0x22a   : > { %v3732_v10 = vpop.f32.mrb[31].mxu1 }
 0x22b   : > { %v5576_v6 = vadd.f32 %v3732_v10, %v3731_v13 }
 0x231   : > { %v3734_v53 = vpop.f32.mrb[32].mxu1 }
 0x232   : > { %v3735_v45 = vpop.f32.mrb[33].mxu1 }
 0x233   : > { %v5578_v26 = vadd.f32 %v3735_v45, %v3734_v53  ;;  %v3737_v55 = vpop.f32.mrb[34].mxu1 }
 0x234   : > { %v3738_v44 = vpop.f32.mrb[35].mxu1 }
 0x235   : > { %v5580_v60 = vadd.f32 %v3738_v44, %v3737_v55  ;;  %v4261_v55 = vld [vmem:[%s5949_s9] sm:$0xff]  }
 0x236   : > { %3031 = vmatpush1.bf16.msra.mxu0 %v4261_v55  ;;  %v4257_v55 = vld [vmem:[%s5947_s7 + $0x124] ss:$8 sps:$4 sm:$0xff]  }
 0x237   : > { %3032 = vmatprep.subr.bf16.mxu0 %v6002_v18 }
 0x240   : > { %v3740_v4 = vpop.f32.mrb[36].mxu1 }
 0x241   : > { %v3741_v5 = vpop.f32.mrb[37].mxu1 }
 0x242   : > { %v5582_v39 = vadd.f32 %v3741_v5, %v3740_v4  ;;  %v3743_v16 = vpop.f32.mrb[38].mxu1 }
 0x243   : > { %v3744_v27 = vpop.f32.mrb[39].mxu1 }
 0x244   : > { %v5584_v31 = vadd.f32 %v3744_v27, %v3743_v16 }
 0x24a   : > { %v3746_v9 = vpop.f32.mrb[40].mxu1 }
 0x24b   : > { %v3747_v41 = vpop.f32.mrb[41].mxu1 }
 0x24c   : > { %v5586_v59 = vadd.f32 %v3747_v41, %v3746_v9  ;;  %v3749_v17 = vpop.f32.mrb[42].mxu1  ;;  %v4262_v41 = vld [vmem:[%s5949_s9 + $0x8] sm:$0xff]  }
 0x24d   : > { %v3750_v32 = vpop.f32.mrb[43].mxu1  ;;  %3033 = vmatpush1.bf16.msra.mxu0 %v4262_v41 }
 0x24e   : > { %v5588_v22 = vadd.f32 %v3750_v32, %v3749_v17  ;;  %3034 = vmatprep.subr.bf16.mxu0 %v6002_v18 }
 0x257   : > { %v3752_v40 = vpop.f32.mrb[44].mxu1 }
 0x258   : > { %v3753_v8 = vpop.f32.mrb[45].mxu1 }
 0x259   : > { %v5593_v54 = vadd.f32 %v3753_v8, %v3752_v40  ;;  %v3755_v25 = vpop.f32.mrb[46].mxu1  ;;  %v2161_v40 = vadd.f32 %v5574_v49, %v5598_v46  ;;  %v2164_v49 = vadd.f32 %v5576_v6, %v5598_v46 }
 0x25a   : > { %v3756_v14 = vpop.f32.mrb[47].mxu1 }
 0x25b   : > { %v5595_v34 = vadd.f32 %v3756_v14, %v3755_v25 }
 0x25f   : > { %v2023_v11 = vpop.f32.mrb[32].mxu0  ;;  %v3816_v24 = vpop.f32.mrb[48].mxu1 }
 0x260   : > { %v3870_v51 = vadd.f32 %v2023_v11, %v5601_v21  ;;  %v2242_v35 = vadd.f32 %v3816_v24, %v2145_v20  ;;  %v2025_v57 = vpop.f32.mrb[33].mxu0  ;;  %v2233_v63 = vpop.f32.mrb[49].mxu1  ;;  %v4249_v20 = vld [vmem:[%s5947_s7 + $0x100] ss:$8 sps:$4 sm:$0xff]  }
 0x261   : > { %v3871_v7 = vadd.f32 %v2025_v57, %v5604_v43  ;;  %v2234_v42 = vadd.f32 %v2233_v63, %v2137_v29  ;;  %v2027_v36 = vpop.f32.mrb[34].mxu0  ;;  %v3817_v38 = vpop.f32.mrb[50].mxu1 }
 0x262   : > { %v3872_v61 = vadd.f32 %v2027_v36, %v5601_v21  ;;  %v2245_v13 = vadd.f32 %v3817_v38, %v2148_v47  ;;  %v2029_v10 = vpop.f32.mrb[35].mxu0  ;;  %v2236_v53 = vpop.f32.mrb[51].mxu1  ;;  %v2296_v0 = vmax.f32 %v3870_v51, 0.0  ;;  %v2304_v44 = vmax.f32 %v2242_v35, 0.0  ;;  %v4254_v35 = vld [vmem:[%s5947_s7 + $0x114] ss:$8 sps:$4 sm:$0xff]  }
 0x263   : > { %v3873_v15 = vadd.f32 %v2029_v10, %v5604_v43  ;;  %v2237_v45 = vadd.f32 %v2236_v53, %v2140_v1  ;;  %v2297_v16 = vmax.f32 %v3871_v7, 0.0  ;;  %v2298_v27 = vmax.f32 %v2234_v42, 0.0  ;;  %v4263_v42 = vld [vmem:[%s5949_s9 + $0x10] sm:$0xff]  }
 0x264   : > { %v2299_v4 = vmax.f32 %v3872_v61, 0.0  ;;  %v2307_v5 = vmax.f32 %v2245_v13, 0.0  ;;  %v2156_v7 = vadd.f32 %v5572_v58, %v5598_v46  ;;  %v4252_v58 = vld [vmem:[%s5947_s7 + $0x110] ss:$8 sps:$4 sm:$0xff]   ;;  %3035 = vmatpush1.bf16.msra.mxu0 %v4263_v42 }
 0x265   : > { %v2300_v9 = vmax.f32 %v3873_v15, 0.0  ;;  %v2301_v23 = vmax.f32 %v2237_v45, 0.0  ;;  %3036 = vmatprep.subr.bf16.mxu0 %v6002_v18 }
 0x266   : > { %v2344_v17 = vpack.c.bf16 %v2299_v4, %v2296_v0  ;;  %v5620_v32 = vpack.c.bf16 %v2307_v5, %v2304_v44 }
 0x267   : > { %v2345_v8 = vpack.c.bf16 %v2300_v9, %v2297_v16  ;;  %v5625_v12 = vpack.c.bf16 %v2301_v23, %v2298_v27  ;;  %v2033_v25 = vpop.f32.mrb[36].mxu0  ;;  %v3820_v14 = vpop.f32.mrb[52].mxu1  ;;  %v4264_v16 = vld [vmem:[%s5949_s9 + $0x18] sm:$0xff]   ;;  %v2177_v23 = vadd.f32 %v5582_v39, %v5598_v46 }
 0x268   : > { %v3874_v11 = vadd.f32 %v2033_v25, %v5601_v21  ;;  %v2258_v24 = vadd.f32 %v3820_v14, %v2161_v40  ;;  %v2035_v29 = vpop.f32.mrb[37].mxu0  ;;  %v2249_v51 = vpop.f32.mrb[53].mxu1  ;;  %v2169_v25 = vadd.f32 %v5578_v26, %v5598_v46  ;;  %v4255_v14 = vld [vmem:[%s5947_s7 + $0x120] ss:$8 sps:$4 sm:$0xff]   ;;  %3037 = vmatpush1.bf16.msra.mxu0 %v4264_v16 }
 0x269   : > { %v3875_v57 = vadd.f32 %v2035_v29, %v5604_v43  ;;  %v2250_v63 = vadd.f32 %v2249_v51, %v2153_v37  ;;  %v2037_v28 = vpop.f32.mrb[38].mxu0  ;;  %v3821_v47 = vpop.f32.mrb[54].mxu1  ;;  %2676 = vmatprep.mubr.bf16.mxu1 %v2345_v8  ;;  %v4260_v29 = vld [vmem:[%s5947_s7 + $0x134] ss:$8 sps:$4 sm:$0xff]   ;;  %3038 = vmatprep.subr.bf16.mxu0 %v6002_v18 }
 0x26a   : > { %v3876_v6 = vadd.f32 %v2037_v28, %v5601_v21  ;;  %v2261_v36 = vadd.f32 %v3821_v47, %v2164_v49  ;;  %v2039_v38 = vpop.f32.mrb[39].mxu0  ;;  %v2252_v1 = vpop.f32.mrb[55].mxu1  ;;  %2677 = vmatmul.mubr.bf16.vlgmr.msra.gmra.mrb[64].mxu1 %v2344_v17  ;;  %v2302_v10 = vmax.f32 %v3874_v11, 0.0  ;;  %v2316_v53 = vmax.f32 %v2258_v24, 0.0 }
 0x26b   : > { %v3877_v61 = vadd.f32 %v2039_v38, %v5604_v43  ;;  %v2253_v13 = vadd.f32 %v2252_v1, %v2156_v7  ;;  %2758 = vmatpush1.bf16.msra.mxu1 %v4249_v20  ;;  %v2303_v0 = vmax.f32 %v3875_v57, 0.0  ;;  %v2310_v44 = vmax.f32 %v2250_v63, 0.0  ;;  %v4265_v63 = vld [vmem:[%s5949_s9 + $0x20] sm:$0xff]  }
 0x26c   : > { %v2305_v15 = vmax.f32 %v3876_v6, 0.0  ;;  %v2319_v45 = vmax.f32 %v2261_v36, 0.0  ;;  %2759 = vmatprep.subr.bf16.mxu1 %v4254_v35  ;;  %v2180_v24 = vadd.f32 %v5584_v31, %v5598_v46  ;;  %v2172_v57 = vadd.f32 %v5580_v60, %v5598_v46  ;;  %v4258_v60 = vld [vmem:[%s5947_s7 + $0x130] ss:$8 sps:$4 sm:$0xff]   ;;  %3039 = vmatpush1.bf16.msra.mxu0 %v4265_v63 }
 0x26d   : > { %v2306_v4 = vmax.f32 %v3877_v61, 0.0  ;;  %v2313_v5 = vmax.f32 %v2253_v13, 0.0  ;;  %3040 = vmatprep.subr.bf16.mxu0 %v6002_v18 }
 0x26e   : > { %v2347_v27 = vpack.c.bf16 %v2305_v15, %v2302_v10  ;;  %v5656_v9 = vpack.c.bf16 %v2319_v45, %v2316_v53  ;;  %v4266_v15 = vld [vmem:[%s5949_s9 + $0x28] sm:$0xff]  }
 0x26f   : > { %v2348_v41 = vpack.c.bf16 %v2306_v4, %v2303_v0  ;;  %v5661_v17 = vpack.c.bf16 %v2313_v5, %v2310_v44  ;;  %v2043_v40 = vpop.f32.mrb[40].mxu0  ;;  %v3824_v8 = vpop.f32.mrb[56].mxu1  ;;  %2760 = vmatpush1.bf16.msra.mxu1 %v4252_v58  ;;  %v2193_v0 = vadd.f32 %v5593_v54, %v5598_v46  ;;  %v4367_v54 = vmov 0.0  }
 0x270   : > { %v3878_v37 = vadd.f32 %v2043_v40, %v5601_v21  ;;  %v2274_v20 = vadd.f32 %v3824_v8, %v2177_v23  ;;  %v2045_v11 = vpop.f32.mrb[41].mxu0  ;;  %v2265_v39 = vpop.f32.mrb[57].mxu1  ;;  %2761 = vmatprep.subr.bf16.mxu1 %v4257_v55  ;;  %3041 = vmatpush1.bf16.msra.mxu0 %v4266_v15 }
 0x271   : > { %v3879_v26 = vadd.f32 %v2045_v11, %v5604_v43  ;;  %v2266_v51 = vadd.f32 %v2265_v39, %v2169_v25  ;;  %v2047_v49 = vpop.f32.mrb[42].mxu0  ;;  %v3825_v35 = vpop.f32.mrb[58].mxu1  ;;  %2686 = vmatprep.mubr.bf16.mxu1 %v2348_v41  ;;  %v2196_v25 = vadd.f32 %v5595_v34, %v5598_v46  ;;  %v4267_v39 = vld [vmem:[%s5949_s9 + $0x30] sm:$0xff]   ;;  %3042 = vmatprep.subr.bf16.mxu0 %v6002_v18 }
 0x272   : > { %v3880_v31 = vadd.f32 %v2047_v49, %v5601_v21  ;;  %v2277_v28 = vadd.f32 %v3825_v35, %v2180_v24  ;;  %v2049_v47 = vpop.f32.mrb[43].mxu0  ;;  %v2268_v7 = vpop.f32.mrb[59].mxu1  ;;  %2687 = vmatmul.mubr.bf16.gmra.mrb[68].mxu1 %v2347_v27  ;;  %v2308_v36 = vmax.f32 %v3878_v37, 0.0  ;;  %v2328_v38 = vmax.f32 %v2274_v20, 0.0 }
 0x273   : > { %v3881_v42 = vadd.f32 %v2049_v47, %v5604_v43  ;;  %v2269_v6 = vadd.f32 %v2268_v7, %v2172_v57  ;;  %2762 = vmatpush1.bf16.msra.mxu1 %v4255_v14  ;;  %v2309_v13 = vmax.f32 %v3879_v26, 0.0  ;;  %v2322_v58 = vmax.f32 %v2266_v51, 0.0  ;;  %v4268_v7 = vld [vmem:[%s5949_s9 + $0x38] sm:$0xff]  }
 0x274   : > { %v2311_v1 = vmax.f32 %v3880_v31, 0.0  ;;  %v2331_v61 = vmax.f32 %v2277_v28, 0.0  ;;  %2763 = vmatprep.subr.bf16.mxu1 %v4260_v29  ;;  %v2185_v27 = vadd.f32 %v5586_v59, %v5598_v46  ;;  %v2188_v59 = vadd.f32 %v5588_v22, %v5598_v46  ;;  %3043 = vmatpush1.bf16.msra.mxu0 %v4267_v39 }
 0x275   : > { %v2312_v10 = vmax.f32 %v3881_v42, 0.0  ;;  %v2325_v53 = vmax.f32 %v2269_v6, 0.0  ;;  %3044 = vmatprep.subr.bf16.mxu0 %v6002_v18 }
 0x276   : > { %v2350_v45 = vpack.c.bf16 %v2311_v1, %v2308_v36  ;;  %v5689_v55 = vpack.c.bf16 %v2331_v61, %v2328_v38 }
 0x277   : > { %v2351_v44 = vpack.c.bf16 %v2312_v10, %v2309_v13  ;;  %v5694_v4 = vpack.c.bf16 %v2325_v53, %v2322_v58  ;;  %v2053_v5 = vpop.f32.mrb[44].mxu0  ;;  %v3828_v16 = vpop.f32.mrb[60].mxu1  ;;  %2764 = vmatpush1.bf16.msra.mxu1 %v4258_v60 }
 0x278   : > { %v3882_v23 = vadd.f32 %v2053_v5, %v5601_v21  ;;  %v2290_v41 = vadd.f32 %v3828_v16, %v2193_v0  ;;  %v2055_v40 = vpop.f32.mrb[45].mxu0  ;;  %v2281_v8 = vpop.f32.mrb[61].mxu1  ;;  %3850 = vmatprep.subr.bf16.mxu1 %v4367_v54  ;;  %3045 = vmatpush1.bf16.msra.mxu0 %v4268_v7 }
 0x279   : > { %v3883_v14 = vadd.f32 %v2055_v40, %v5604_v43  ;;  %v2282_v37 = vadd.f32 %v2281_v8, %v2185_v27  ;;  %v2057_v20 = vpop.f32.mrb[46].mxu0  ;;  %v3829_v11 = vpop.f32.mrb[62].mxu1  ;;  %2696 = vmatprep.mubr.bf16.mxu1 %v2351_v44  ;;  %3046 = vmatprep.subr.bf16.mxu0 %v6002_v18 }
 0x27a   : > { %v3884_v24 = vadd.f32 %v2057_v20, %v5601_v21  ;;  %v2293_v34 = vadd.f32 %v3829_v11, %v2196_v25  ;;  %v2059_v29 = vpop.f32.mrb[47].mxu0  ;;  %v2284_v26 = vpop.f32.mrb[63].mxu1  ;;  %2697 = vmatmul.mubr.bf16.gmra.mrb[72].mxu1 %v2350_v45  ;;  %v2314_v35 = vmax.f32 %v3882_v23, 0.0  ;;  %v2340_v57 = vmax.f32 %v2290_v41, 0.0 }
 0x27b   : > { %v3885_v51 = vadd.f32 %v2059_v29, %v5604_v43  ;;  %v2285_v49 = vadd.f32 %v2284_v26, %v2188_v59  ;;  %v2315_v46 = vmax.f32 %v3883_v14, 0.0  ;;  %v2334_v31 = vmax.f32 %v2282_v37, 0.0 }
 0x27c   : > { %v2317_v63 = vmax.f32 %v3884_v24, 0.0  ;;  %v2343_v22 = vmax.f32 %v2293_v34, 0.0 }
 0x27d   : > { %v2318_v28 = vmax.f32 %v3885_v51, 0.0  ;;  %v2337_v47 = vmax.f32 %v2285_v49, 0.0 }
 0x27e   : > { %v2353_v42 = vpack.c.bf16 %v2317_v63, %v2314_v35  ;;  %v5714_v6 = vpack.c.bf16 %v2343_v22, %v2340_v57 }
 0x27f   : > { %v2354_v60 = vpack.c.bf16 %v2318_v28, %v2315_v46  ;;  %v5717_v36 = vpack.c.bf16 %v2337_v47, %v2334_v31  ;;  %v2063_v38 = vpop.f32.mrb[48].mxu0 }
 0x280   : > { %v3886_v1 = vadd.f32 %v2063_v38, %v5601_v21  ;;  %v2065_v61 = vpop.f32.mrb[49].mxu0 }
 0x281   : > { %v3887_v13 = vadd.f32 %v2065_v61, %v5604_v43  ;;  %v2067_v58 = vpop.f32.mrb[50].mxu0  ;;  %2706 = vmatprep.mubr.bf16.mxu1 %v2354_v60 }
 0x282   : > { %v3888_v10 = vadd.f32 %v2067_v58, %v5601_v21  ;;  %v2069_v53 = vpop.f32.mrb[51].mxu0  ;;  %2707 = vmatmul.mubr.bf16.gmra.mrb[76].mxu1 %v2353_v42  ;;  %v2320_v45 = vmax.f32 %v3886_v1, 0.0 }
 0x283   : > { %v3889_v15 = vadd.f32 %v2069_v53, %v5604_v43  ;;  %v2321_v44 = vmax.f32 %v3887_v13, 0.0 }
 0x284   : > { %v2323_v0 = vmax.f32 %v3888_v10, 0.0 }
 0x285   : > { %v2324_v5 = vmax.f32 %v3889_v15, 0.0 }
 0x286   : > { %v2356_v16 = vpack.c.bf16 %v2323_v0, %v2320_v45 }
 0x287   : > { %v2357_v27 = vpack.c.bf16 %v2324_v5, %v2321_v44  ;;  %v2073_v23 = vpop.f32.mrb[52].mxu0 }
 0x288   : > { %v3890_v41 = vadd.f32 %v2073_v23, %v5601_v21  ;;  %v2075_v40 = vpop.f32.mrb[53].mxu0 }
 0x289   : > { %v3891_v8 = vadd.f32 %v2075_v40, %v5604_v43  ;;  %v2077_v25 = vpop.f32.mrb[54].mxu0  ;;  %2716 = vmatprep.mubr.bf16.mxu1 %v2357_v27 }
 0x28a   : > { %v3892_v14 = vadd.f32 %v2077_v25, %v5601_v21  ;;  %v2079_v37 = vpop.f32.mrb[55].mxu0  ;;  %2717 = vmatmul.mubr.bf16.gmra.mrb[80].mxu1 %v2356_v16  ;;  %v2326_v11 = vmax.f32 %v3890_v41, 0.0 }
 0x28b   : > { %v3893_v20 = vadd.f32 %v2079_v37, %v5604_v43  ;;  %v2327_v39 = vmax.f32 %v3891_v8, 0.0 }
 0x28c   : > { %v2329_v59 = vmax.f32 %v3892_v14, 0.0 }
 0x28d   : > { %v2330_v24 = vmax.f32 %v3893_v20, 0.0 }
 0x28e   : > { %v2359_v34 = vpack.c.bf16 %v2329_v59, %v2326_v11 }
 0x28f   : > { %v2360_v29 = vpack.c.bf16 %v2330_v24, %v2327_v39  ;;  %v2083_v26 = vpop.f32.mrb[56].mxu0 }
 0x290   : > { %v3894_v51 = vadd.f32 %v2083_v26, %v5601_v21  ;;  %v2085_v49 = vpop.f32.mrb[57].mxu0 }
 0x291   : > { %v3895_v35 = vadd.f32 %v2085_v49, %v5604_v43  ;;  %v2087_v57 = vpop.f32.mrb[58].mxu0  ;;  %2726 = vmatprep.mubr.bf16.mxu1 %v2360_v29 }
 0x292   : > { %v3896_v63 = vadd.f32 %v2087_v57, %v5601_v21  ;;  %v2089_v22 = vpop.f32.mrb[59].mxu0  ;;  %2727 = vmatmul.mubr.bf16.gmra.mrb[84].mxu1 %v2359_v34  ;;  %v2332_v31 = vmax.f32 %v3894_v51, 0.0 }
 0x293   : > { %v3897_v46 = vadd.f32 %v2089_v22, %v5604_v43  ;;  %v2333_v47 = vmax.f32 %v3895_v35, 0.0 }
 0x294   : > { %v2335_v28 = vmax.f32 %v3896_v63, 0.0 }
 0x295   : > { %v2336_v7 = vmax.f32 %v3897_v46, 0.0 }
 0x296   : > { %v2362_v42 = vpack.c.bf16 %v2335_v28, %v2332_v31 }
 0x297   : > { %v2363_v60 = vpack.c.bf16 %v2336_v7, %v2333_v47  ;;  %v2093_v38 = vpop.f32.mrb[60].mxu0 }
 0x298   : > { %v3898_v1 = vadd.f32 %v2093_v38, %v5601_v21  ;;  %v2095_v61 = vpop.f32.mrb[61].mxu0 }
 0x299   : > { %v3899_v13 = vadd.f32 %v2095_v61, %v5604_v43  ;;  %v2097_v58 = vpop.f32.mrb[62].mxu0  ;;  %2736 = vmatprep.mubr.bf16.mxu1 %v2363_v60 }
 0x29a   : > { %v3900_v10 = vadd.f32 %v2097_v58, %v5601_v21  ;;  %v2099_v53 = vpop.f32.mrb[63].mxu0  ;;  %2737 = vmatmul.mubr.bf16.gmra.mrb[88].mxu1 %v2362_v42  ;;  %v2338_v45 = vmax.f32 %v3898_v1, 0.0  ;;  %v3349_v21 = vsel %vm884_vm0, %v5355_v52, 0  ;;  %v3355_v52 = vsel %vm884_vm0, %v5398_v62, 0 }
 0x29b   : > { %v3901_v15 = vadd.f32 %v2099_v53, %v5604_v43  ;;  %v2339_v44 = vmax.f32 %v3899_v13, 0.0  ;;  %v3352_v43 = vsel %vm884_vm0, %v5384_v48, 0  ;;  %v3358_v48 = vsel %vm884_vm0, %v5411_v56, 0 }
 0x29c   : > { %v2341_v0 = vmax.f32 %v3900_v10, 0.0  ;;  %v3361_v62 = vsel %vm884_vm0, %v5419_v2, 0  ;;  %v3364_v56 = vsel %vm884_vm0, %v5425_v19, 0  ;;  %v3367_v2 = vsel %vm884_vm0, %v5430_v3, 0  ;;  %v4270_v3 = vld [vmem:[%s5949_s9 + $0x48] sm:$0xff]  }
 0x29d   : > { %v2342_v5 = vmax.f32 %v3901_v15, 0.0  ;;  %v3370_v19 = vsel %vm884_vm0, %v5432_v50, 0 }
 0x29e   : > { %v2365_v16 = vpack.c.bf16 %v2341_v0, %v2338_v45 }
 0x29f   : > { %v2366_v27 = vpack.c.bf16 %v2342_v5, %v2339_v44 }
 0x2a1   : > { %2746 = vmatprep.mubr.bf16.mxu1 %v2366_v27 }
 0x2a2   : > { %2747 = vmatmul.mubr.bf16.gmra.mrb[92].mxu1 %v2365_v16 }
 0x2a3   : > { %2789 = vmatprep.mubr.bf16.mxu1 %v6002_v18 }
 0x2aa   : > { %3649 = vmatmul.mubr.msk.bf16.vlgmr.msra.gmra.mrb[64].mxu1 %vm1851_vm1, %v5625_v12  ;;  %v2408_v12 = vld [vmem:[%s5948_s8] sm:$0x3] }
 0x2ab   : > { %3851 = vmatpush3.bf16.xpose.msra.mxu1 %v3349_v21  ;;  %2799 = vmatprep.mubr.bf16.mxu1 %v6002_v18  ;;  %v5795_v50 = vrot.slane %v2408_v12, %v6035_v30 }
 0x2ac   : > { %3852 = vmatprep.subr.bf16.mxu1 %v4367_v54 }
 0x2b2   : > { %3650 = vmatmul.mubr.msk.bf16.gmra.mrb[68].mxu1 %vm1851_vm1, %v5620_v32  ;;  %v4269_v32 = vld [vmem:[%s5949_s9 + $0x40] sm:$0xff]  }
 0x2b3   : > { %3853 = vmatpush3.bf16.xpose.msra.mxu1 %v3352_v43  ;;  %2809 = vmatprep.mubr.bf16.mxu1 %v6002_v18 }
 0x2b4   : > { %3854 = vmatprep.subr.bf16.mxu1 %v4367_v54  ;;  %3047 = vmatpush1.bf16.msra.mxu0 %v4269_v32 }
 0x2b5   : > { %3048 = vmatprep.subr.bf16.mxu0 %v6002_v18 }
 0x2b8   : > { %3049 = vmatpush1.bf16.msra.mxu0 %v4270_v3 }
 0x2b9   : > { %3830 = vmatprep.subr.bf16.mxu0 %v4367_v54 }
 0x2ba   : > { %3651 = vmatmul.mubr.msk.bf16.gmra.mrb[72].mxu1 %vm1851_vm1, %v5661_v17 }
 0x2bb   : > { %3855 = vmatpush3.bf16.xpose.msra.mxu1 %v3355_v52  ;;  %2819 = vmatprep.mubr.bf16.mxu1 %v6002_v18 }
 0x2bc   : > { %3856 = vmatprep.subr.bf16.mxu1 %v4367_v54 }
 0x2c2   : > { %3652 = vmatmul.mubr.msk.bf16.gmra.mrb[76].mxu1 %vm1851_vm1, %v5656_v9  ;;  %v5798_v9 = vrot.slane %v2408_v12, %v6036_v33 }
 0x2c3   : > { %3857 = vmatpush3.bf16.xpose.msra.mxu1 %v3358_v48  ;;  %2829 = vmatprep.mubr.bf16.mxu1 %v6002_v18 }
 0x2c4   : > { %3858 = vmatprep.subr.bf16.mxu1 %v4367_v54 }
 0x2ca   : > { %3653 = vmatmul.mubr.msk.bf16.gmra.mrb[80].mxu1 %vm1851_vm1, %v5694_v4 }
 0x2cb   : > { %3859 = vmatpush3.bf16.xpose.msra.mxu1 %v3361_v62  ;;  %2839 = vmatprep.mubr.bf16.mxu1 %v6002_v18 }
 0x2cc   : > { %3860 = vmatprep.subr.bf16.mxu1 %v4367_v54 }
 0x2d2   : > { %3654 = vmatmul.mubr.msk.bf16.gmra.mrb[84].mxu1 %vm1851_vm1, %v5689_v55 }
 0x2d3   : > { %3861 = vmatpush3.bf16.xpose.msra.mxu1 %v3364_v56  ;;  %2849 = vmatprep.mubr.bf16.mxu1 %v6002_v18 }
 0x2d4   : > { %3862 = vmatprep.subr.bf16.mxu1 %v4367_v54 }
 0x2da   : > { %3655 = vmatmul.mubr.msk.bf16.gmra.mrb[88].mxu1 %vm1851_vm1, %v5717_v36 }
 0x2db   : > { %3863 = vmatpush3.bf16.xpose.msra.mxu1 %v3367_v2  ;;  %2859 = vmatprep.mubr.bf16.mxu1 %v6002_v18 }
 0x2dc   : > { %3864 = vmatprep.subr.bf16.mxu1 %v4367_v54 }
 0x2e2   : > { %3656 = vmatmul.mubr.msk.bf16.gmra.mrb[92].mxu1 %vm1851_vm1, %v5714_v6 }
 0x2e3   : > { %3865 = vmatpush3.bf16.xpose.msra.mxu1 %v3370_v19  ;;  %3866 = vmatprep.mubr.msk.bf16.mxu1 %vm4368_vm3, %v4367_v54 }
 0x37d   : > { %v2791_v17 = vpop.f32.mrb[64].mxu1 }
 0x37e   : > { %v3902_v18 = vadd.f32 %v2791_v17, %v5795_v50  ;;  %v2793_v55 = vpop.f32.mrb[65].mxu1 }
 0x37f   : > { %v3903_v4 = vadd.f32 %v2793_v55, %v5798_v9  ;;  %v2795_v6 = vpop.f32.mrb[66].mxu1 }
 0x380   : > { %v3904_v36 = vadd.f32 %v2795_v6, %v5795_v50  ;;  %v2797_v23 = vpop.f32.mrb[67].mxu1  ;;  %v2870_v40 = vmax.f32 %v3902_v18, 0.0 }
 0x381   : > { %v3905_v41 = vadd.f32 %v2797_v23, %v5798_v9  ;;  %v2871_v25 = vmax.f32 %v3903_v4, 0.0 }
 0x382   : > { %v2872_v8 = vmax.f32 %v3904_v36, 0.0 }
 0x383   : > { %v2873_v14 = vmax.f32 %v3905_v41, 0.0 }
 0x384   : > { %v2902_v37 = vpack.c.bf16 %v2872_v8, %v2870_v40 }
 0x385   : > { %v2903_v33 = vpack.c.bf16 %v2873_v14, %v2871_v25  ;;  %v2801_v20 = vpop.f32.mrb[68].mxu1 }
 0x386   : > { %v3906_v11 = vadd.f32 %v2801_v20, %v5795_v50  ;;  %v2803_v59 = vpop.f32.mrb[69].mxu1 }
 0x387   : > { %v3907_v39 = vadd.f32 %v2803_v59, %v5798_v9  ;;  %v2805_v24 = vpop.f32.mrb[70].mxu1  ;;  %3668 = vmatprep.mubr.msk.bf16.mxu0 %vm3005_vm2, %v2903_v33 }
 0x388   : > { %v3908_v34 = vadd.f32 %v2805_v24, %v5795_v50  ;;  %v2807_v29 = vpop.f32.mrb[71].mxu1  ;;  %3063 = vmatmul.mubr.bf16.vlgmr.msra.gmra.mrb[64].mxu0 %v2902_v37  ;;  %v2874_v51 = vmax.f32 %v3906_v11, 0.0 }
 0x389   : > { %v3909_v26 = vadd.f32 %v2807_v29, %v5798_v9  ;;  %v2875_v35 = vmax.f32 %v3907_v39, 0.0 }
 0x38a   : > { %v2876_v49 = vmax.f32 %v3908_v34, 0.0 }
 0x38b   : > { %v2877_v57 = vmax.f32 %v3909_v26, 0.0 }
 0x38c   : > { %v2904_v63 = vpack.c.bf16 %v2876_v49, %v2874_v51 }
 0x38d   : > { %v2905_v22 = vpack.c.bf16 %v2877_v57, %v2875_v35  ;;  %v2811_v46 = vpop.f32.mrb[72].mxu1 }
 0x38e   : > { %v3910_v31 = vadd.f32 %v2811_v46, %v5795_v50  ;;  %v2813_v28 = vpop.f32.mrb[73].mxu1 }
 0x38f   : > { %v3911_v47 = vadd.f32 %v2813_v28, %v5798_v9  ;;  %v2815_v7 = vpop.f32.mrb[74].mxu1  ;;  %3669 = vmatprep.mubr.msk.bf16.mxu0 %vm3005_vm2, %v2905_v22 }
 0x390   : > { %v3912_v42 = vadd.f32 %v2815_v7, %v5795_v50  ;;  %v2817_v60 = vpop.f32.mrb[75].mxu1  ;;  %3071 = vmatmul.mubr.bf16.gmra.mrb[68].mxu0 %v2904_v63  ;;  %v2878_v1 = vmax.f32 %v3910_v31, 0.0 }
 0x391   : > { %v3913_v38 = vadd.f32 %v2817_v60, %v5798_v9  ;;  %v2879_v13 = vmax.f32 %v3911_v47, 0.0 }
 0x392   : > { %v2880_v61 = vmax.f32 %v3912_v42, 0.0 }
 0x393   : > { %v2881_v58 = vmax.f32 %v3913_v38, 0.0 }
 0x394   : > { %v2906_v10 = vpack.c.bf16 %v2880_v61, %v2878_v1 }
 0x395   : > { %v2907_v53 = vpack.c.bf16 %v2881_v58, %v2879_v13  ;;  %v2821_v15 = vpop.f32.mrb[76].mxu1 }
 0x396   : > { %v3914_v45 = vadd.f32 %v2821_v15, %v5795_v50  ;;  %v2823_v0 = vpop.f32.mrb[77].mxu1 }
 0x397   : > { %v3915_v44 = vadd.f32 %v2823_v0, %v5798_v9  ;;  %v2825_v5 = vpop.f32.mrb[78].mxu1  ;;  %3670 = vmatprep.mubr.msk.bf16.mxu0 %vm3005_vm2, %v2907_v53 }
 0x398   : > { %v3916_v16 = vadd.f32 %v2825_v5, %v5795_v50  ;;  %v2827_v27 = vpop.f32.mrb[79].mxu1  ;;  %3079 = vmatmul.mubr.bf16.gmra.mrb[72].mxu0 %v2906_v10  ;;  %v2882_v43 = vmax.f32 %v3914_v45, 0.0 }
 0x399   : > { %v3917_v21 = vadd.f32 %v2827_v27, %v5798_v9  ;;  %v2883_v48 = vmax.f32 %v3915_v44, 0.0 }
 0x39a   : > { %v2884_v52 = vmax.f32 %v3916_v16, 0.0 }
 0x39b   : > { %v2885_v62 = vmax.f32 %v3917_v21, 0.0 }
 0x39c   : > { %v2908_v56 = vpack.c.bf16 %v2884_v52, %v2882_v43 }
 0x39d   : > { %v2909_v2 = vpack.c.bf16 %v2885_v62, %v2883_v48  ;;  %v2831_v19 = vpop.f32.mrb[80].mxu1  ;;  %v3249_v48 = vld [vmem:[%s5955_s15] sm:$0x1] }
 0x39e   : > { %v3918_v32 = vadd.f32 %v2831_v19, %v5795_v50  ;;  %v2833_v3 = vpop.f32.mrb[81].mxu1  ;;  %3867 = vmatmul.mubr.msk.bf16.vlgmr.msra.gmra.mrb[96].mxu1 %vm884_vm0, %v3249_v48  ;;  %v5849_v62 = vld [vmem:[%s5950_s10] ss:$0 sm:$0xff] }
 0x39f   : > { %v3919_v12 = vadd.f32 %v2833_v3, %v5798_v9  ;;  %v2835_v17 = vpop.f32.mrb[82].mxu1  ;;  %3671 = vmatprep.mubr.msk.bf16.mxu0 %vm3005_vm2, %v2909_v2 }
 0x3a0   : > { %v3920_v18 = vadd.f32 %v2835_v17, %v5795_v50  ;;  %v2837_v55 = vpop.f32.mrb[83].mxu1  ;;  %3087 = vmatmul.mubr.bf16.gmra.mrb[76].mxu0 %v2908_v56  ;;  %v2886_v6 = vmax.f32 %v3918_v32, 0.0 }
 0x3a1   : > { %v3921_v4 = vadd.f32 %v2837_v55, %v5798_v9  ;;  %v2887_v23 = vmax.f32 %v3919_v12, 0.0 }
 0x3a2   : > { %v2888_v36 = vmax.f32 %v3920_v18, 0.0 }
 0x3a3   : > { %v2889_v41 = vmax.f32 %v3921_v4, 0.0 }
 0x3a4   : > { %v2910_v40 = vpack.c.bf16 %v2888_v36, %v2886_v6 }
 0x3a5   : > { %v2911_v8 = vpack.c.bf16 %v2889_v41, %v2887_v23  ;;  %v2841_v25 = vpop.f32.mrb[84].mxu1 }
 0x3a6   : > { %v3922_v14 = vadd.f32 %v2841_v25, %v5795_v50  ;;  %v2843_v37 = vpop.f32.mrb[85].mxu1 }
 0x3a7   : > { %v3923_v33 = vadd.f32 %v2843_v37, %v5798_v9  ;;  %v2845_v20 = vpop.f32.mrb[86].mxu1  ;;  %3672 = vmatprep.mubr.msk.bf16.mxu0 %vm3005_vm2, %v2911_v8 }
 0x3a8   : > { %v3924_v11 = vadd.f32 %v2845_v20, %v5795_v50  ;;  %v2847_v59 = vpop.f32.mrb[87].mxu1  ;;  %3095 = vmatmul.mubr.bf16.gmra.mrb[80].mxu0 %v2910_v40  ;;  %v2890_v24 = vmax.f32 %v3922_v14, 0.0 }
 0x3a9   : > { %v3925_v39 = vadd.f32 %v2847_v59, %v5798_v9  ;;  %v2891_v29 = vmax.f32 %v3923_v33, 0.0 }
 0x3aa   : > { %v2892_v34 = vmax.f32 %v3924_v11, 0.0 }
 0x3ab   : > { %v2893_v26 = vmax.f32 %v3925_v39, 0.0 }
 0x3ac   : > { %v2912_v51 = vpack.c.bf16 %v2892_v34, %v2890_v24 }
 0x3ad   : > { %v2913_v49 = vpack.c.bf16 %v2893_v26, %v2891_v29  ;;  %v2851_v35 = vpop.f32.mrb[88].mxu1 }
 0x3ae   : > { %v3926_v57 = vadd.f32 %v2851_v35, %v5795_v50  ;;  %v2853_v63 = vpop.f32.mrb[89].mxu1 }
 0x3af   : > { %v3927_v22 = vadd.f32 %v2853_v63, %v5798_v9  ;;  %v2855_v46 = vpop.f32.mrb[90].mxu1  ;;  %3673 = vmatprep.mubr.msk.bf16.mxu0 %vm3005_vm2, %v2913_v49 }
 0x3b0   : > { %v3928_v31 = vadd.f32 %v2855_v46, %v5795_v50  ;;  %v2857_v28 = vpop.f32.mrb[91].mxu1  ;;  %3103 = vmatmul.mubr.bf16.gmra.mrb[84].mxu0 %v2912_v51  ;;  %v2894_v7 = vmax.f32 %v3926_v57, 0.0 }
 0x3b1   : > { %v3929_v47 = vadd.f32 %v2857_v28, %v5798_v9  ;;  %v2895_v60 = vmax.f32 %v3927_v22, 0.0 }
 0x3b2   : > { %v2896_v42 = vmax.f32 %v3928_v31, 0.0 }
 0x3b3   : > { %v2897_v38 = vmax.f32 %v3929_v47, 0.0 }
 0x3b4   : > { %v2914_v1 = vpack.c.bf16 %v2896_v42, %v2894_v7 }
 0x3b5   : > { %v2915_v61 = vpack.c.bf16 %v2897_v38, %v2895_v60  ;;  %v2861_v13 = vpop.f32.mrb[92].mxu1 }
 0x3b6   : > { %v3930_v58 = vadd.f32 %v2861_v13, %v5795_v50  ;;  %v2863_v10 = vpop.f32.mrb[93].mxu1 }
 0x3b7   : > { %v3931_v53 = vadd.f32 %v2863_v10, %v5798_v9  ;;  %v2865_v15 = vpop.f32.mrb[94].mxu1  ;;  %3674 = vmatprep.mubr.msk.bf16.mxu0 %vm3005_vm2, %v2915_v61 }
 0x3b8   : > { %v3932_v45 = vadd.f32 %v2865_v15, %v5795_v50  ;;  %v2867_v0 = vpop.f32.mrb[95].mxu1  ;;  %3111 = vmatmul.mubr.bf16.gmra.mrb[88].mxu0 %v2914_v1  ;;  %v2898_v5 = vmax.f32 %v3930_v58, 0.0  ;;  %v3335_v50 = vld [vmem:[#allocation3] sm:$0x1] }
 0x3b9   : > { %v3933_v44 = vadd.f32 %v2867_v0, %v5798_v9  ;;  %v2899_v27 = vmax.f32 %v3931_v53, 0.0  ;;  %v3258_v9 = vld [vmem:[#allocation2] sm:$0x1]  ;;  %3338 = vperm.xlu0 %4107, %v3335_v50  }
 0x3ba   : > { %v2900_v16 = vmax.f32 %v3932_v45, 0.0  ;;  %3261 = vperm.xlu1 %4108, %v3258_v9  }
 0x3bb   : > { %v2901_v21 = vmax.f32 %v3933_v44, 0.0 }
 0x3bc   : > { %v2916_v43 = vpack.c.bf16 %v2900_v16, %v2898_v5 }
 0x3bd   : > { %v2917_v52 = vpack.c.bf16 %v2901_v21, %v2899_v27 }
 0x3bf   : > { %3675 = vmatprep.mubr.msk.bf16.mxu0 %vm3005_vm2, %v2917_v52 }
 0x3c0   : > { %3119 = vmatmul.mubr.bf16.gmra.mrb[92].mxu0 %v2916_v43 }
 0x3c1   : > { %3846 = vmatprep.mubr.msk.bf16.mxu0 %vm4368_vm3, %v4367_v54 }
 0x45b   : > { %v3064_v56 = vpop.f32.mrb[64].mxu0 }
 0x45c   : > { %v3065_v2 = vadd.f32 %v5849_v62, %v3064_v56  ;;  %v3066_v19 = vpop.f32.mrb[65].mxu0 }
 0x45d   : > { %v3067_v32 = vpop.f32.mrb[66].mxu0 }
 0x45e   : > { %v3068_v3 = vadd.f32 %v5849_v62, %v3067_v32  ;;  %v3069_v12 = vpop.f32.mrb[67].mxu0  ;;  %v3127_v17 = vmax.f32 %v3065_v2, 0.0 }
 0x460   : > { %v3128_v18 = vmax.f32 %v3068_v3, 0.0 }
 0x462   : > { %v3143_v55 = vpack.c.bf16 %v3128_v18, %v3127_v17 }
 0x463   : > { %v3072_v4 = vpop.f32.mrb[68].mxu0 }
 0x464   : > { %v3073_v6 = vadd.f32 %v5849_v62, %v3072_v4  ;;  %v3074_v36 = vpop.f32.mrb[69].mxu0  ;;  %v3272_v23 = vsel %vm884_vm0, %v3143_v55, 0 }
 0x465   : > { %v3075_v41 = vpop.f32.mrb[70].mxu0  ;;  %3831 = vmatpush3.bf16.xpose.msra.mxu0 %v3272_v23 }
 0x466   : > { %v3076_v40 = vadd.f32 %v5849_v62, %v3075_v41  ;;  %v3077_v8 = vpop.f32.mrb[71].mxu0  ;;  %3832 = vmatprep.subr.bf16.mxu0 %v4367_v54  ;;  %v3129_v25 = vmax.f32 %v3073_v6, 0.0 }
 0x468   : > { %v3130_v14 = vmax.f32 %v3076_v40, 0.0 }
 0x46a   : > { %v3144_v37 = vpack.c.bf16 %v3130_v14, %v3129_v25 }
 0x46b   : > { %v3080_v33 = vpop.f32.mrb[72].mxu0 }
 0x46c   : > { %v3081_v20 = vadd.f32 %v5849_v62, %v3080_v33  ;;  %v3082_v11 = vpop.f32.mrb[73].mxu0  ;;  %v3275_v59 = vsel %vm884_vm0, %v3144_v37, 0  ;;  %v3151_v33 = vld [vmem:[%s5951_s11] sm:$0x1] }
 0x46d   : > { %v3083_v39 = vpop.f32.mrb[74].mxu0  ;;  %3833 = vmatpush3.bf16.xpose.msra.mxu0 %v3275_v59 }
 0x46e   : > { %v3084_v24 = vadd.f32 %v5849_v62, %v3083_v39  ;;  %v3085_v34 = vpop.f32.mrb[75].mxu0  ;;  %3834 = vmatprep.subr.bf16.mxu0 %v4367_v54  ;;  %v3131_v29 = vmax.f32 %v3081_v20, 0.0  ;;  %v3339_v39 = vpop.permute.xlu0 %3338 }
 0x470   : > { %v3132_v26 = vmax.f32 %v3084_v24, 0.0  ;;  %v3262_v24 = vpop.permute.xlu1 %3261 }
 0x471   : > { %v3406_v20 = vpop.f32.mrb[96].mxu1 }
 0x472   : > { %v3145_v51 = vpack.c.bf16 %v3132_v26, %v3131_v29  ;;  %v3868_v11 = vpop.f32.mrb[97].mxu1  ;;  %v3412_v29 = vld [vmem:[%s565_s26] sm:$0x1]  ;;  %v3267_v26 = vrot.slane %v3262_v24, %v6035_v30  ;;  %s4305_s26 = scalar_lea.vmem %s4304_s25, 32 }
 0x473   : > { %v3088_v49 = vpop.f32.mrb[76].mxu0  ;;  %v3409_v59 = vpop.f32.mrb[98].mxu1  ;;  %p4307_p2 = scmp.lt.s32.totalorder %s4305_s26, %s4299_s1 }
 0x474   : > { %v3089_v35 = vadd.f32 %v5849_v62, %v3088_v49  ;;  %v3090_v57 = vpop.f32.mrb[77].mxu0  ;;  %v3278_v63 = vsel %vm884_vm0, %v3145_v51, 0 }
 0x475   : > { %v3091_v22 = vpop.f32.mrb[78].mxu0  ;;  %3835 = vmatpush3.bf16.xpose.msra.mxu0 %v3278_v63  ;;  %p4308_p3 = por %p4307_p2, %p4306_p1 }
 0x476   : > { %v3092_v46 = vadd.f32 %v5849_v62, %v3091_v22  ;;  %v3093_v31 = vpop.f32.mrb[79].mxu0  ;;  %3836 = vmatprep.subr.bf16.mxu0 %v4367_v54  ;;  %v3133_v28 = vmax.f32 %v3089_v35, 0.0 }
 0x477   : > { %p4309_p4 = pnand %p4308_p3, %p4302_p0 }
 0x478   : > { %v3134_v47 = vmax.f32 %v3092_v46, 0.0 }
 0x47a   : > { %v3146_v7 = vpack.c.bf16 %v3134_v47, %v3133_v28 }
 0x47b   : > { %v3096_v42 = vpop.f32.mrb[80].mxu0 }
 0x47c   : > { %v3097_v60 = vadd.f32 %v5849_v62, %v3096_v42  ;;  %v3098_v38 = vpop.f32.mrb[81].mxu0  ;;  %v3281_v1 = vsel %vm884_vm0, %v3146_v7, 0 }
 0x47d   : > { %v3099_v61 = vpop.f32.mrb[82].mxu0  ;;  %3837 = vmatpush3.bf16.xpose.msra.mxu0 %v3281_v1 }
 0x47e   : > { %v3100_v13 = vadd.f32 %v5849_v62, %v3099_v61  ;;  %v3101_v58 = vpop.f32.mrb[83].mxu0  ;;  %3838 = vmatprep.subr.bf16.mxu0 %v4367_v54  ;;  %v3135_v10 = vmax.f32 %v3097_v60, 0.0 }
 0x480   : > { %v3136_v53 = vmax.f32 %v3100_v13, 0.0 }
 0x482   : > { %v3147_v15 = vpack.c.bf16 %v3136_v53, %v3135_v10 }
 0x483   : > { %v3104_v45 = vpop.f32.mrb[84].mxu0 }
 0x484   : > { %v3105_v0 = vadd.f32 %v5849_v62, %v3104_v45  ;;  %v3106_v44 = vpop.f32.mrb[85].mxu0  ;;  %v3284_v5 = vsel %vm884_vm0, %v3147_v15, 0 }
 0x485   : > { %v3107_v16 = vpop.f32.mrb[86].mxu0  ;;  %3839 = vmatpush3.bf16.xpose.msra.mxu0 %v3284_v5 }
 0x486   : > { %v3108_v27 = vadd.f32 %v5849_v62, %v3107_v16  ;;  %v3109_v21 = vpop.f32.mrb[87].mxu0  ;;  %3840 = vmatprep.subr.bf16.mxu0 %v4367_v54  ;;  %v3137_v43 = vmax.f32 %v3105_v0, 0.0 }
 0x488   : > { %v3138_v52 = vmax.f32 %v3108_v27, 0.0 }
 0x48a   : > { %v3148_v48 = vpack.c.bf16 %v3138_v52, %v3137_v43 }
 0x48b   : > { %v3112_v50 = vpop.f32.mrb[88].mxu0 }
 0x48c   : > { %v3113_v9 = vadd.f32 %v5849_v62, %v3112_v50  ;;  %v3114_v56 = vpop.f32.mrb[89].mxu0  ;;  %v3287_v2 = vsel %vm884_vm0, %v3148_v48, 0 }
 0x48d   : > { %v3115_v19 = vpop.f32.mrb[90].mxu0  ;;  %3841 = vmatpush3.bf16.xpose.msra.mxu0 %v3287_v2 }
 0x48e   : > { %v3116_v32 = vadd.f32 %v5849_v62, %v3115_v19  ;;  %v3117_v3 = vpop.f32.mrb[91].mxu0  ;;  %3842 = vmatprep.subr.bf16.mxu0 %v4367_v54  ;;  %v3139_v12 = vmax.f32 %v3113_v9, 0.0 }
 0x490   : > { %v3140_v17 = vmax.f32 %v3116_v32, 0.0 }
 0x492   : > { %v3149_v18 = vpack.c.bf16 %v3140_v17, %v3139_v12 }
 0x493   : > { %v3120_v55 = vpop.f32.mrb[92].mxu0 }
 0x494   : > { %v3121_v4 = vadd.f32 %v5849_v62, %v3120_v55  ;;  %v3122_v6 = vpop.f32.mrb[93].mxu0  ;;  %v3290_v36 = vsel %vm884_vm0, %v3149_v18, 0 }
 0x495   : > { %v3123_v23 = vpop.f32.mrb[94].mxu0  ;;  %3843 = vmatpush3.bf16.xpose.msra.mxu0 %v3290_v36 }
 0x496   : > { %v3124_v41 = vadd.f32 %v5849_v62, %v3123_v23  ;;  %v3125_v40 = vpop.f32.mrb[95].mxu0  ;;  %3844 = vmatprep.subr.bf16.mxu0 %v4367_v54  ;;  %v3141_v8 = vmax.f32 %v3121_v4, 0.0  ;;  %v3869_v62 = vpop.f32.mrb[99].mxu1  ;;  %v3344_v54 = vrot.slane %v3339_v39, %v6035_v30 }
 0x498   : > { %v3142_v25 = vmax.f32 %v3124_v41, 0.0  ;;  %v3407_v34 = vadd.f32 %v3406_v20, %v3344_v54 }
 0x49a   : > { %v3150_v14 = vpack.c.bf16 %v3142_v25, %v3141_v8  ;;  %v3413_v51 = vmul.f32 %v3412_v29, %v3407_v34 }
 0x49c   : > { %v3293_v37 = vsel %vm884_vm0, %v3150_v14, 0 }
 0x49d   : > { %3845 = vmatpush3.bf16.xpose.msra.mxu0 %v3293_v37 }
 0x4a4   : > { %3847 = vmatmul.mubr.msk.bf16.vlgmr.msra.gmra.mrb[96].mxu0 %vm884_vm0, %v3151_v33 }
 0x577   : > { %v3329_v49 = vpop.f32.mrb[96].mxu0 }
 0x578   : > { %v3330_v35 = vadd.f32 %v3329_v49, %v3267_v26  ;;  %v3848_v57 = vpop.f32.mrb[97].mxu0 }
 0x579   : > { %v3332_v63 = vpop.f32.mrb[98].mxu0 }
 0x57a   : > { %v3414_v22 = vadd.f32 %v3413_v51, %v3330_v35  ;;  %v3849_v46 = vpop.f32.mrb[99].mxu0 }
 0x57c   : > { %v3681_v31 = vmul.f32 -1.442695, %v3414_v22 }
 0x57e   : > { %4279 = vpow2.f32 %v3681_v31 }
 0x588   : > { %v4280_v28 = vpop.eup %4279 }
 0x589   : > { %v3418_v47 = vadd.f32 1.0, %v4280_v28 }
 0x58b   : > { %4281 = vrcp.f32 %v3418_v47 }
 0x595   : > { %v4282_v30 = vpop.eup %4281 }
 0x596   : > { %3421 = vst [vmem:[%s556_s27] sm:$0x1] %v4282_v30 }
 0x597   : > { %4312 = shalt.err (!%p4309_p4)
}
 0x598   : > { %s4313_s23 = scalar_lea.hbm %s5898_s20, 16  ;;  %s4317_s2 = scalar_lea.hbm %s5956_s17, 32 }
 0x599   : > { %p4314_p7 = scmp.ne.s32.totalorder %s5898_s20, %s4313_s23  ;;  %p4318_p10 = scmp.lt.u32.totalorder %s5898_s20, %s5956_s17 }
 0x59a   : > { %p4319_p11 = scmp.lt.u32.totalorder %s4317_s2, %s4313_s23  ;;  %p4321_p13 = scmp.lt.u32.totalorder %s4313_s23, %s5898_s20 }
 0x59b   : > { %p4315_p8 = pnand %p4314_p7, %p4504_p5 }
 0x59c   : > { %p4320_p12 = por %p4319_p11, %p4318_p10 }
 0x59d   : > { %p4316_p9 = pneg %p4315_p8 }
 0x59e   : > { %p4322_p0 = por %p4321_p13, %p4320_p12 }
 0x5a0   : > { %p4323_p1 = pnand %p4322_p0, %p4316_p9 }
 0x5a2   : > { %4326 = shalt.err (!%p4323_p1)
}
 0x5a3   : > { %3998 = dma.vmem_to_hbm [thread:$0]  (%p4504_p5), %s5900_s16, 16, %s5898_s20, %s3423_s19  }
 0x5a4 PF: > { %p4004_p2 = scmp.ge.s32.totalorder %s4361_s30, 2  ;;  %s3447_s1 = sand.u32 1, %s4349_s28  }
 0x5a5   : > { %s3448_s25 = scalar_lea.sflag [#allocation5], %s3447_s1 }
 0x5a6   : > { %p4001_p3 = pnand %p4004_p2, %p4508_p6 }
 0x5a8   : > { %4344 = dma.done.wait (!%p4001_p3), %s3448_s25, 16  }
 0x5a9   : > { %4346 = vsyncadd (!%p4001_p3), %s3448_s25, 4294967280  ;;  %s6038_s26 = sld [smem:[#allocation7_spill]]  ;;  %s6039_s0 = sld [smem:[#allocation8_spill]] }
 0x5aa   : > { %p31_p4 = scmp.ge.s32.totalorder %s4491_s18, 4   ;;  %s6040_s28 = smov %s4353_s29 }
 0x5ab   : > { %s6042_s30 = smov %s4491_s18 }
 0x5ac   :  { %33 = sbr.rel (!%p31_p4) target bundleno = 7 (0x7), region = 127 }
 0x5af   : > { %s6041_s29 = smov %s6038_s26 }
 0x5b3   :  { %3452 = vsyncpa [#allocation5], 1 }
 0x5b4   :  { %3454 = vsyncpa [#allocation5 + $0x1], 1 }

</bundles_post_ra>
